<compile_context>
chip_gen: v7x
topology: tpu7x:2x2x1
jax: 0.10.0
libtpu: 0.0.40
codegen_flags: <defaults>
</compile_context>

<pallas_src>
import functools

import jax
import jax.numpy as jnp
from jax.experimental import pallas as pl
from jax.experimental.pallas import tpu as pltpu


_LANES = 128
_SLAB = 8 * _LANES  # pad flat buffers to whole (8,128) vregs


def _lane_slab(x):
    """Flatten to 1-D, zero-pad to a multiple of 8*128, reshape to (rows, 128).

    Exact for element-order-invariant reductions (L1 / MSE sums): both members
    of every pred/gt pair are padded with zeros, so padding adds 0 to the sum.
    """
    flat = jnp.ravel(x).astype(jnp.float32)
    n = flat.shape[0]
    padded = ((n + _SLAB - 1) // _SLAB) * _SLAB
    if padded != n:
        flat = jnp.pad(flat, (0, padded - n))
    return flat.reshape(padded // _LANES, _LANES)


def _grad_slab(grad):
    """(M, 3) -> (3, Mp) lane-dense; padded columns are unit-x so (||g||-1)^2 == 0."""
    g = grad.astype(jnp.float32)
    m = g.shape[0]
    mp = ((m + _LANES - 1) // _LANES) * _LANES
    pad = mp - m
    gx = jnp.pad(g[:, 0], (0, pad), constant_values=1.0)
    gy = jnp.pad(g[:, 1], (0, pad))
    gz = jnp.pad(g[:, 2], (0, pad))
    return jnp.stack([gx, gy, gz], axis=0)


def _reduce_sum(x):
    # Reduce the sublane axis first (mostly elementwise VPU adds across vregs),
    # then a single cross-lane XLU reduce at the end.
    return jnp.sum(jnp.sum(x, axis=0, keepdims=True))


# ----------------------------------------------------------------------------
# Pallas kernel: all active reductions fused into one invocation.
# Inputs are lane-dense f32 slabs; outputs are 8 scalars written to SMEM.
# Branches with zero weight are specialized away at trace time.
# ----------------------------------------------------------------------------
def _loss_kernel(*refs,
                 has_sdf, has_lbs, use_var,
                 mask_weight, lbs_weight, sdf_weight, eik_weight,
                 inv_n_mask, inv_n_rgb, inv_n_sdf, inv_n_eik,
                 inv_n_lbs, pose_scale, shape_scale):
    out_ref = refs[-1]
    it = iter(refs[:-1])
    zero = jnp.float32(0.0)

    # --- mask loss: L1(reduction='mean') -------------------------------------
    pm = next(it)[...]
    om = next(it)[...]
    mask_loss = _reduce_sum(jnp.abs(pm - om)) * inv_n_mask

    # --- rgb loss: L1(reduction='mean') over flattened (-1, 3) ---------------
    rgb = next(it)[...]
    rgb_gt = next(it)[...]
    rgb_loss = _reduce_sum(jnp.abs(rgb - rgb_gt)) * inv_n_rgb

    total = rgb_loss + mask_weight * mask_loss

    sdf_loss = zero
    eik_loss = zero
    if has_sdf:
        # --- sdf consistency: mean(sdf * sdf) --------------------------------
        sdf = next(it)[...]
        sdf_loss = _reduce_sum(sdf * sdf) * inv_n_sdf

        # --- eikonal: mean((||grad||_2 - 1)^2), grad fed as (3, Mp) -----------
        g = next(it)
        g0 = g[0:1, :]
        g1 = g[1:2, :]
        g2 = g[2:3, :]
        gnorm = jnp.sqrt(g0 * g0 + g1 * g1 + g2 * g2)   # VPU adds + EUP sqrt
        dn = gnorm - 1.0
        eik_loss = jnp.sum(dn * dn) * inv_n_eik
        total = total + sdf_weight * sdf_loss + eik_weight * eik_loss

    lbs_loss = zero
    pose_loss = zero
    shape_loss = zero
    if has_lbs:
        # --- lbs loss: plain MSE mean -----------------------------------------
        lbs = next(it)[...]
        gt_lbs = next(it)[...]
        dl = lbs - gt_lbs
        lbs_loss = _reduce_sum(dl * dl) * inv_n_lbs

        # --- posedirs loss: MSE(p*10, g*10) == 100 * MSE(p, g) -----------------
        # (the *100 is folded into pose_scale = 100 / count on the host)
        pose = next(it)[...]
        gt_pose = next(it)[...]
        dp = pose - gt_pose
        pose_loss = _reduce_sum(dp * dp) * pose_scale

        # --- shapedirs loss: mean(100*(p-g)^2 * 1/(50*var)) ---------------------
        shp = next(it)[...]
        gt_shp = next(it)[...]
        ds = shp - gt_shp
        if use_var:
            inv_var50 = next(it)[...]                     # (1, 150) = 1/(50*var)
            shape_loss = _reduce_sum(ds * ds * inv_var50) * shape_scale
        else:
            shape_loss = _reduce_sum(ds * ds) * shape_scale

        total = (total
                 + lbs_loss * (lbs_weight * 0.1)
                 + pose_loss * (lbs_weight * 10.0)
                 + shape_loss * (lbs_weight * 10.0))

    out_ref[0] = total
    out_ref[1] = rgb_loss
    out_ref[2] = mask_loss
    out_ref[3] = sdf_loss
    out_ref[4] = eik_loss
    out_ref[5] = lbs_loss
    out_ref[6] = pose_loss
    out_ref[7] = shape_loss


# ----------------------------------------------------------------------------
# Python wrapper mimicking the nn.Module
# ----------------------------------------------------------------------------
class PallasLoss:
    def __init__(self, mask_weight, var_expression=None, lbs_weight=0.0,
                 sdf_consistency_weight=0.0, eikonal_weight=0.0,
                 vgg_feature_weight=0.0):
        self.mask_weight = float(mask_weight)
        self.lbs_weight = float(lbs_weight)
        self.sdf_consistency_weight = float(sdf_consistency_weight)
        self.eikonal_weight = float(eikonal_weight)
        self.vgg_feature_weight = float(vgg_feature_weight)
        self.var_expression = None
        self.inv_var_over_50 = None
        if var_expression is not None:
            # torch: var.unsqueeze(1).expand(1, 3, -1).reshape(1, -1)
            v = jnp.asarray(var_expression, jnp.float32).reshape(1, -1)       # (1, E)
            v = jnp.broadcast_to(v[:, None, :], (1, 3, v.shape[-1])).reshape(1, -1)
            self.var_expression = v                                           # (1, 3E)
            # Precompute the reciprocal once: replaces two divides per element.
            self.inv_var_over_50 = (1.0 / (50.0 * v)).astype(jnp.float32)
        # TODO(synk): vgg_feature_weight > 0 (VGGPerceptualLoss) needs a pretrained
        # VGG16 backbone and has no clean in-script Pallas equivalent.

    def _get_gt_blendshape(self, index_batch, flame_lbs_weights,
                           flame_posedirs, flame_shapedirs, ghostbone):
        # Pure-JAX glue: data-dependent gathers / layout reshuffles.
        # TODO(synk): fuse this gather into the kernel via scalar prefetch
        # (PrefetchScalarGridSpec + pl.Element row gather) to avoid the extra
        # HBM round-trip of the gathered gt arrays.
        if ghostbone:
            gt_lbs = jnp.zeros((index_batch.shape[0], 6), jnp.float32)
            gt_lbs = gt_lbs.at[:, 1:].set(flame_lbs_weights[index_batch, :])
        else:
            gt_lbs = flame_lbs_weights[index_batch, :]
        gt_shapedirs = flame_shapedirs[index_batch, :, 100:]                    # (P, 3, 50)
        V = flame_posedirs.shape[1] // 3
        gt_posedirs = jnp.transpose(
            flame_posedirs.reshape(36, V, 3), (1, 0, 2))[index_batch, :, :]     # (P, 36, 3)
        return gt_lbs, gt_posedirs, gt_shapedirs

    def forward(self, model_outputs, ground_truth):
        f32 = jnp.float32

        pred_mask = _lane_slab(model_outputs['predicted_mask'])
        obj_mask = _lane_slab(ground_truth['object_mask'])
        n_mask = model_outputs['predicted_mask'].size

        rgb = _lane_slab(model_outputs['rgb_image'])
        rgb_gt = _lane_slab(ground_truth['rgb'])
        n_rgb = model_outputs['rgb_image'].size

        has_sdf = self.sdf_consistency_weight > 0
        has_lbs = self.lbs_weight != 0
        use_var = self.var_expression is not None

        inputs = [pred_mask, obj_mask, rgb, rgb_gt]
        consts = dict(inv_n_mask=1.0 / n_mask, inv_n_rgb=1.0 / n_rgb,
                      inv_n_sdf=0.0, inv_n_eik=0.0,
                      inv_n_lbs=0.0, pose_scale=0.0, shape_scale=0.0)

        if has_sdf:
            assert self.eikonal_weight > 0
            sdf = model_outputs['sdf_values']
            grad = model_outputs['grad_thetas']
            assert grad.ndim == 2 and grad.shape[1] == 3
            inputs += [_lane_slab(sdf), _grad_slab(grad)]
            consts['inv_n_sdf'] = 1.0 / sdf.size
            consts['inv_n_eik'] = 1.0 / grad.shape[0]

        if has_lbs:
            lbs_w = model_outputs['lbs_weights']
            num_points = lbs_w.shape[0]
            ghostbone = lbs_w.shape[-1] == 6
            gt_lbs, gt_posedirs, gt_shapedirs = self._get_gt_blendshape(
                model_outputs['index_batch'],
                model_outputs['flame_lbs_weights'],
                model_outputs['flame_posedirs'],
                model_outputs['flame_shapedirs'],
                ghostbone)

            lbs = lbs_w.reshape(num_points, -1).astype(f32)
            gt_lbs = gt_lbs.reshape(num_points, -1).astype(f32)
            pose = model_outputs['posedirs'].reshape(num_points, -1).astype(f32)
            gt_pose = gt_posedirs.reshape(num_points, -1).astype(f32)
            shape_p = model_outputs['shapedirs'].reshape(num_points, -1)[:, :50 * 3].astype(f32)
            gt_shape = gt_shapedirs.reshape(num_points, -1).astype(f32)

            consts['inv_n_lbs'] = 1.0 / lbs.size
            # The torch code scales pred/gt by 10 before the MSE; that is a
            # constant *100 on the mean, folded into the host-side scale.
            consts['pose_scale'] = 100.0 / pose.size
            consts['shape_scale'] = 100.0 / shape_p.size

            # lbs / posedirs are plain MSE means (order-invariant) -> lane-dense.
            # shapedirs keeps (P,150) so the per-column 1/(50*var) weight broadcasts.
            inputs += [_lane_slab(lbs), _lane_slab(gt_lbs),
                       _lane_slab(pose), _lane_slab(gt_pose),
                       shape_p, gt_shape]
            if use_var:
                inputs.append(self.inv_var_over_50)

        kernel = functools.partial(
            _loss_kernel,
            has_sdf=has_sdf, has_lbs=has_lbs, use_var=use_var,
            mask_weight=self.mask_weight, lbs_weight=self.lbs_weight,
            sdf_weight=self.sdf_consistency_weight,
            eik_weight=self.eikonal_weight,
            **consts)

        vmem = pl.BlockSpec(memory_space=pltpu.MemorySpace.VMEM)
        losses = pl.pallas_call(
            kernel,
            out_shape=jax.ShapeDtypeStruct((8,), jnp.float32),
            in_specs=[vmem] * len(inputs),
            out_specs=pl.BlockSpec(memory_space=pltpu.MemorySpace.SMEM),
        )(*inputs)

        out = {'loss': losses[0], 'rgb_loss': losses[1], 'mask_loss': losses[2]}
        if has_sdf:
            out['sdf_consistency'] = losses[3]
            out['eikonal'] = losses[4]
        if has_lbs:
            out['lbs_loss'] = losses[5]
            out['posedirs_loss'] = losses[6]
            out['shapedirs_loss'] = losses[7]
        return out


# ----------------------------------------------------------------------------
# Pure-JAX reference (mirrors the torch math exactly; for correctness check)
# ----------------------------------------------------------------------------
def _reference(loss_mod, model_outputs, ground_truth):
    f32 = jnp.float32
    out = {}
    pm = model_outputs['predicted_mask'].reshape(-1).astype(f32)
    om = ground_truth['object_mask'].reshape(-1).astype(f32)
    mask_loss = jnp.mean(jnp.abs(pm - om))
    rgb = model_outputs['rgb_image'].reshape(-1, 3).astype(f32)
    rgb_gt = ground_truth['rgb'].reshape(-1, 3).astype(f32)
    rgb_loss = jnp.mean(jnp.abs(rgb - rgb_gt))
    loss = rgb_loss + loss_mod.mask_weight * mask_loss
    out.update(rgb_loss=rgb_loss, mask_loss=mask_loss)

    if loss_mod.sdf_consistency_weight > 0:
        sdf = model_outputs['sdf_values'].astype(f32)
        sdf_loss = jnp.mean(sdf * sdf)
        g = model_outputs['grad_thetas'].astype(f32)
        eik = jnp.mean((jnp.linalg.norm(g, axis=1) - 1.0) ** 2)
        loss = loss + sdf_loss * loss_mod.sdf_consistency_weight + eik * loss_mod.eikonal_weight
        out.update(sdf_consistency=sdf_loss, eikonal=eik)

    if loss_mod.lbs_weight != 0:
        P = model_outputs['lbs_weights'].shape[0]
        ghostbone = model_outputs['lbs_weights'].shape[-1] == 6
        gt_lbs, gt_pd, gt_sd = loss_mod._get_gt_blendshape(
            model_outputs['index_batch'], model_outputs['flame_lbs_weights'],
            model_outputs['flame_posedirs'], model_outputs['flame_shapedirs'], ghostbone)
        lbs_loss = jnp.mean(
            (model_outputs['lbs_weights'].reshape(P, -1).astype(f32) - gt_lbs.reshape(P, -1)) ** 2)
        pose_loss = jnp.mean(
            (model_outputs['posedirs'].reshape(P, -1).astype(f32) * 10 - gt_pd.reshape(P, -1) * 10) ** 2)
        sd = (model_outputs['shapedirs'].reshape(P, -1)[:, :150].astype(f32) * 10
              - gt_sd.reshape(P, -1) * 10)
        if loss_mod.var_expression is not None:
            shape_loss = jnp.mean((sd ** 2) / loss_mod.var_expression / 50.0)
        else:
            shape_loss = jnp.mean(sd ** 2)
        loss = (loss + lbs_loss * loss_mod.lbs_weight * 0.1
                + pose_loss * loss_mod.lbs_weight * 10.0
                + shape_loss * loss_mod.lbs_weight * 10.0)
        out.update(lbs_loss=lbs_loss, posedirs_loss=pose_loss, shapedirs_loss=shape_loss)

    out['loss'] = loss
    return out


if __name__ == "__main__":
    key = jax.random.PRNGKey(0)
    ks = jax.random.split(key, 16)

    N = 2048     # number of rendered pixels / rays
    M = 256      # number of sdf / eikonal sample points
    P = 256      # number of canonical surface points (lbs branch)
    V = 512      # number of FLAME template vertices

    model_outputs = {
        'predicted_mask': jax.random.uniform(ks[0], (N,), jnp.float32),
        'rgb_image': jax.random.uniform(ks[1], (N, 3), jnp.float32),
        'sdf_values': 0.05 * jax.random.normal(ks[2], (M, 1), jnp.float32),
        'grad_thetas': jax.random.normal(ks[3], (M, 3), jnp.float32),
        'lbs_weights': jax.nn.softmax(jax.random.normal(ks[4], (P, 6), jnp.float32), axis=-1),
        'posedirs': 0.01 * jax.random.normal(ks[5], (P, 36, 3), jnp.float32),
        'shapedirs': 0.01 * jax.random.normal(ks[6], (P, 3, 50), jnp.float32),
        'index_batch': jax.random.randint(ks[7], (P,), 0, V),
        'flame_lbs_weights': jax.nn.softmax(
            jax.random.normal(ks[8], (V, 5), jnp.float32), axis=-1),
        'flame_posedirs': 0.01 * jax.random.normal(ks[9], (36, V * 3), jnp.float32),
        'flame_shapedirs': 0.01 * jax.random.normal(ks[10], (V, 3, 150), jnp.float32),
    }
    ground_truth = {
        'object_mask': (jax.random.uniform(ks[11], (N,)) > 0.5).astype(jnp.float32),
        'rgb': jax.random.uniform(ks[12], (N, 3), jnp.float32),
    }
    var_expression = 0.5 + jax.random.uniform(ks[13], (1, 50), jnp.float32)  # (1, 50) > 0

    loss_mod = PallasLoss(mask_weight=2.0,
                          var_expression=var_expression,
                          lbs_weight=1.0,
                          sdf_consistency_weight=1.0,
                          eikonal_weight=0.1,
                          vgg_feature_weight=0.0)

    out = loss_mod.forward(model_outputs, ground_truth)
    jax.block_until_ready(out['loss'])

    ref = _reference(loss_mod, model_outputs, ground_truth)
    for k in ref:
        assert jnp.allclose(out[k], ref[k], rtol=1e-4, atol=1e-6), (k, out[k], ref[k])

    print("KERNEL_OK")
</pallas_src>

<mosaic_0001>
module attributes {stable_mosaic.version = 11 : i64} {
  func.func @_loss_kernel(%arg0: memref<16x128xf32, #tpu.memory_space<vmem>>, %arg1: memref<16x128xf32, #tpu.memory_space<vmem>>, %arg2: memref<48x128xf32, #tpu.memory_space<vmem>>, %arg3: memref<48x128xf32, #tpu.memory_space<vmem>>, %arg4: memref<8x128xf32, #tpu.memory_space<vmem>>, %arg5: memref<3x256xf32, #tpu.memory_space<vmem>>, %arg6: memref<16x128xf32, #tpu.memory_space<vmem>>, %arg7: memref<16x128xf32, #tpu.memory_space<vmem>>, %arg8: memref<216x128xf32, #tpu.memory_space<vmem>>, %arg9: memref<216x128xf32, #tpu.memory_space<vmem>>, %arg10: memref<256x150xf32, #tpu.memory_space<vmem>>, %arg11: memref<256x150xf32, #tpu.memory_space<vmem>>, %arg12: memref<1x150xf32, #tpu.memory_space<vmem>>, %arg13: memref<8xf32, #tpu.memory_space<smem>>) attributes {dimension_semantics = [], scalar_prefetch = 0 : i64, scratch_operands = 0 : i64, tpu.core_type = #tpu.core_type<tc>} {
    %c0 = arith.constant 0 : index
    %c0_0 = arith.constant 0 : index
    %0 = vector.load %arg0[%c0, %c0_0] : memref<16x128xf32, #tpu.memory_space<vmem>>, vector<16x128xf32>
    %c0_1 = arith.constant 0 : index
    %c0_2 = arith.constant 0 : index
    %1 = vector.load %arg1[%c0_1, %c0_2] : memref<16x128xf32, #tpu.memory_space<vmem>>, vector<16x128xf32>
    %2 = arith.subf %0, %1 : vector<16x128xf32>
    %3 = math.absf %2 : vector<16x128xf32>
    %cst = arith.constant dense<0.000000e+00> : vector<128xf32>
    %4 = vector.multi_reduction <add>, %3, %cst [0] : vector<16x128xf32> to vector<128xf32>
    %5 = vector.shape_cast %4 : vector<128xf32> to vector<1x128xf32>
    %6 = vector.shape_cast %5 : vector<1x128xf32> to vector<1x1x128xf32>
    %cst_3 = arith.constant dense<0.000000e+00> : vector<1xf32>
    %7 = vector.multi_reduction <add>, %6, %cst_3 [1, 2] : vector<1x1x128xf32> to vector<1xf32>
    %8 = vector.shape_cast %7 : vector<1xf32> to vector<1x1x1xf32>
    %9 = vector.extract %8[0, 0, 0] : f32 from vector<1x1x1xf32>
    %cst_4 = arith.constant 4.8828125E-4 : f32
    %10 = arith.mulf %9, %cst_4 : f32
    %c0_5 = arith.constant 0 : index
    %c0_6 = arith.constant 0 : index
    %11 = vector.load %arg2[%c0_5, %c0_6] : memref<48x128xf32, #tpu.memory_space<vmem>>, vector<48x128xf32>
    %c0_7 = arith.constant 0 : index
    %c0_8 = arith.constant 0 : index
    %12 = vector.load %arg3[%c0_7, %c0_8] : memref<48x128xf32, #tpu.memory_space<vmem>>, vector<48x128xf32>
    %13 = arith.subf %11, %12 : vector<48x128xf32>
    %14 = math.absf %13 : vector<48x128xf32>
    %cst_9 = arith.constant dense<0.000000e+00> : vector<128xf32>
    %15 = vector.multi_reduction <add>, %14, %cst_9 [0] : vector<48x128xf32> to vector<128xf32>
    %16 = vector.shape_cast %15 : vector<128xf32> to vector<1x128xf32>
    %17 = vector.shape_cast %16 : vector<1x128xf32> to vector<1x1x128xf32>
    %cst_10 = arith.constant dense<0.000000e+00> : vector<1xf32>
    %18 = vector.multi_reduction <add>, %17, %cst_10 [1, 2] : vector<1x1x128xf32> to vector<1xf32>
    %19 = vector.shape_cast %18 : vector<1xf32> to vector<1x1x1xf32>
    %20 = vector.extract %19[0, 0, 0] : f32 from vector<1x1x1xf32>
    %cst_11 = arith.constant 1.62760422E-4 : f32
    %21 = arith.mulf %20, %cst_11 : f32
    %cst_12 = arith.constant 2.000000e+00 : f32
    %22 = arith.mulf %cst_12, %10 : f32
    %23 = arith.addf %21, %22 : f32
    %c0_13 = arith.constant 0 : index
    %c0_14 = arith.constant 0 : index
    %24 = vector.load %arg4[%c0_13, %c0_14] : memref<8x128xf32, #tpu.memory_space<vmem>>, vector<8x128xf32>
    %25 = arith.mulf %24, %24 : vector<8x128xf32>
    %cst_15 = arith.constant dense<0.000000e+00> : vector<128xf32>
    %26 = vector.multi_reduction <add>, %25, %cst_15 [0] : vector<8x128xf32> to vector<128xf32>
    %27 = vector.shape_cast %26 : vector<128xf32> to vector<1x128xf32>
    %28 = vector.shape_cast %27 : vector<1x128xf32> to vector<1x1x128xf32>
    %cst_16 = arith.constant dense<0.000000e+00> : vector<1xf32>
    %29 = vector.multi_reduction <add>, %28, %cst_16 [1, 2] : vector<1x1x128xf32> to vector<1xf32>
    %30 = vector.shape_cast %29 : vector<1xf32> to vector<1x1x1xf32>
    %31 = vector.extract %30[0, 0, 0] : f32 from vector<1x1x1xf32>
    %cst_17 = arith.constant 3.906250e-03 : f32
    %32 = arith.mulf %31, %cst_17 : f32
    %c0_18 = arith.constant 0 : index
    %c0_19 = arith.constant 0 : index
    %33 = vector.load %arg5[%c0_18, %c0_19] : memref<3x256xf32, #tpu.memory_space<vmem>>, vector<1x256xf32>
    %c1 = arith.constant 1 : index
    %c0_20 = arith.constant 0 : index
    %34 = vector.load %arg5[%c1, %c0_20] : memref<3x256xf32, #tpu.memory_space<vmem>>, vector<1x256xf32>
    %c2 = arith.constant 2 : index
    %c0_21 = arith.constant 0 : index
    %35 = vector.load %arg5[%c2, %c0_21] : memref<3x256xf32, #tpu.memory_space<vmem>>, vector<1x256xf32>
    %36 = arith.mulf %33, %33 : vector<1x256xf32>
    %37 = arith.mulf %34, %34 : vector<1x256xf32>
    %38 = arith.addf %36, %37 : vector<1x256xf32>
    %39 = arith.mulf %35, %35 : vector<1x256xf32>
    %40 = arith.addf %38, %39 : vector<1x256xf32>
    %41 = math.sqrt %40 : vector<1x256xf32>
    %cst_22 = arith.constant 1.000000e+00 : f32
    %42 = vector.broadcast %cst_22 : f32 to vector<1x256xf32>
    %43 = arith.subf %41, %42 : vector<1x256xf32>
    %44 = arith.mulf %43, %43 : vector<1x256xf32>
    %45 = vector.shape_cast %44 : vector<1x256xf32> to vector<1x1x256xf32>
    %cst_23 = arith.constant dense<0.000000e+00> : vector<1xf32>
    %46 = vector.multi_reduction <add>, %45, %cst_23 [1, 2] : vector<1x1x256xf32> to vector<1xf32>
    %47 = vector.shape_cast %46 : vector<1xf32> to vector<1x1x1xf32>
    %48 = vector.extract %47[0, 0, 0] : f32 from vector<1x1x1xf32>
    %cst_24 = arith.constant 3.906250e-03 : f32
    %49 = arith.mulf %48, %cst_24 : f32
    %cst_25 = arith.constant 1.000000e+00 : f32
    %50 = arith.mulf %cst_25, %32 : f32
    %51 = arith.addf %23, %50 : f32
    %cst_26 = arith.constant 1.000000e-01 : f32
    %52 = arith.mulf %cst_26, %49 : f32
    %53 = arith.addf %51, %52 : f32
    %c0_27 = arith.constant 0 : index
    %c0_28 = arith.constant 0 : index
    %54 = vector.load %arg6[%c0_27, %c0_28] : memref<16x128xf32, #tpu.memory_space<vmem>>, vector<16x128xf32>
    %c0_29 = arith.constant 0 : index
    %c0_30 = arith.constant 0 : index
    %55 = vector.load %arg7[%c0_29, %c0_30] : memref<16x128xf32, #tpu.memory_space<vmem>>, vector<16x128xf32>
    %56 = arith.subf %54, %55 : vector<16x128xf32>
    %57 = arith.mulf %56, %56 : vector<16x128xf32>
    %cst_31 = arith.constant dense<0.000000e+00> : vector<128xf32>
    %58 = vector.multi_reduction <add>, %57, %cst_31 [0] : vector<16x128xf32> to vector<128xf32>
    %59 = vector.shape_cast %58 : vector<128xf32> to vector<1x128xf32>
    %60 = vector.shape_cast %59 : vector<1x128xf32> to vector<1x1x128xf32>
    %cst_32 = arith.constant dense<0.000000e+00> : vector<1xf32>
    %61 = vector.multi_reduction <add>, %60, %cst_32 [1, 2] : vector<1x1x128xf32> to vector<1xf32>
    %62 = vector.shape_cast %61 : vector<1xf32> to vector<1x1x1xf32>
    %63 = vector.extract %62[0, 0, 0] : f32 from vector<1x1x1xf32>
    %cst_33 = arith.constant 6.51041686E-4 : f32
    %64 = arith.mulf %63, %cst_33 : f32
    %c0_34 = arith.constant 0 : index
    %c0_35 = arith.constant 0 : index
    %65 = vector.load %arg8[%c0_34, %c0_35] : memref<216x128xf32, #tpu.memory_space<vmem>>, vector<216x128xf32>
    %c0_36 = arith.constant 0 : index
    %c0_37 = arith.constant 0 : index
    %66 = vector.load %arg9[%c0_36, %c0_37] : memref<216x128xf32, #tpu.memory_space<vmem>>, vector<216x128xf32>
    %67 = arith.subf %65, %66 : vector<216x128xf32>
    %68 = arith.mulf %67, %67 : vector<216x128xf32>
    %cst_38 = arith.constant dense<0.000000e+00> : vector<128xf32>
    %69 = vector.multi_reduction <add>, %68, %cst_38 [0] : vector<216x128xf32> to vector<128xf32>
    %70 = vector.shape_cast %69 : vector<128xf32> to vector<1x128xf32>
    %71 = vector.shape_cast %70 : vector<1x128xf32> to vector<1x1x128xf32>
    %cst_39 = arith.constant dense<0.000000e+00> : vector<1xf32>
    %72 = vector.multi_reduction <add>, %71, %cst_39 [1, 2] : vector<1x1x128xf32> to vector<1xf32>
    %73 = vector.shape_cast %72 : vector<1xf32> to vector<1x1x1xf32>
    %74 = vector.extract %73[0, 0, 0] : f32 from vector<1x1x1xf32>
    %cst_40 = arith.constant 0.00361689809 : f32
    %75 = arith.mulf %74, %cst_40 : f32
    %c0_41 = arith.constant 0 : index
    %c0_42 = arith.constant 0 : index
    %76 = vector.load %arg10[%c0_41, %c0_42] : memref<256x150xf32, #tpu.memory_space<vmem>>, vector<256x150xf32>
    %c0_43 = arith.constant 0 : index
    %c0_44 = arith.constant 0 : index
    %77 = vector.load %arg11[%c0_43, %c0_44] : memref<256x150xf32, #tpu.memory_space<vmem>>, vector<256x150xf32>
    %78 = arith.subf %76, %77 : vector<256x150xf32>
    %c0_45 = arith.constant 0 : index
    %c0_46 = arith.constant 0 : index
    %79 = vector.load %arg12[%c0_45, %c0_46] : memref<1x150xf32, #tpu.memory_space<vmem>>, vector<1x150xf32>
    %80 = arith.mulf %78, %78 : vector<256x150xf32>
    %81 = vector.broadcast %79 : vector<1x150xf32> to vector<256x150xf32>
    %82 = arith.mulf %80, %81 : vector<256x150xf32>
    %cst_47 = arith.constant dense<0.000000e+00> : vector<150xf32>
    %83 = vector.multi_reduction <add>, %82, %cst_47 [0] : vector<256x150xf32> to vector<150xf32>
    %84 = vector.shape_cast %83 : vector<150xf32> to vector<1x150xf32>
    %85 = vector.shape_cast %84 : vector<1x150xf32> to vector<1x1x150xf32>
    %cst_48 = arith.constant dense<0.000000e+00> : vector<1xf32>
    %86 = vector.multi_reduction <add>, %85, %cst_48 [1, 2] : vector<1x1x150xf32> to vector<1xf32>
    %87 = vector.shape_cast %86 : vector<1xf32> to vector<1x1x1xf32>
    %88 = vector.extract %87[0, 0, 0] : f32 from vector<1x1x1xf32>
    %cst_49 = arith.constant 0.00260416674 : f32
    %89 = arith.mulf %88, %cst_49 : f32
    %cst_50 = arith.constant 1.000000e-01 : f32
    %90 = arith.mulf %64, %cst_50 : f32
    %91 = arith.addf %53, %90 : f32
    %cst_51 = arith.constant 1.000000e+01 : f32
    %92 = arith.mulf %75, %cst_51 : f32
    %93 = arith.addf %91, %92 : f32
    %cst_52 = arith.constant 1.000000e+01 : f32
    %94 = arith.mulf %89, %cst_52 : f32
    %95 = arith.addf %93, %94 : f32
    %c0_53 = arith.constant 0 : index
    %96 = memref.load %arg13[%c0_53] : memref<8xf32, #tpu.memory_space<smem>>
    memref.store %95, %arg13[%c0_53] : memref<8xf32, #tpu.memory_space<smem>>
    %c1_54 = arith.constant 1 : index
    %97 = memref.load %arg13[%c1_54] : memref<8xf32, #tpu.memory_space<smem>>
    memref.store %21, %arg13[%c1_54] : memref<8xf32, #tpu.memory_space<smem>>
    %c2_55 = arith.constant 2 : index
    %98 = memref.load %arg13[%c2_55] : memref<8xf32, #tpu.memory_space<smem>>
    memref.store %10, %arg13[%c2_55] : memref<8xf32, #tpu.memory_space<smem>>
    %c3 = arith.constant 3 : index
    %99 = memref.load %arg13[%c3] : memref<8xf32, #tpu.memory_space<smem>>
    memref.store %32, %arg13[%c3] : memref<8xf32, #tpu.memory_space<smem>>
    %c4 = arith.constant 4 : index
    %100 = memref.load %arg13[%c4] : memref<8xf32, #tpu.memory_space<smem>>
    memref.store %49, %arg13[%c4] : memref<8xf32, #tpu.memory_space<smem>>
    %c5 = arith.constant 5 : index
    %101 = memref.load %arg13[%c5] : memref<8xf32, #tpu.memory_space<smem>>
    memref.store %64, %arg13[%c5] : memref<8xf32, #tpu.memory_space<smem>>
    %c6 = arith.constant 6 : index
    %102 = memref.load %arg13[%c6] : memref<8xf32, #tpu.memory_space<smem>>
    memref.store %75, %arg13[%c6] : memref<8xf32, #tpu.memory_space<smem>>
    %c7 = arith.constant 7 : index
    %103 = memref.load %arg13[%c7] : memref<8xf32, #tpu.memory_space<smem>>
    memref.store %89, %arg13[%c7] : memref<8xf32, #tpu.memory_space<smem>>
    return
  }
}

</mosaic_0001>

<bundles_post_ra>
// kernel: tpu_custom_call.1
= control target key start
LH: loop header
LB: loop body
LE: loop exit
PB: predicated region body
PF: predicated region fallthrough
CT: control target
= control target key end

     0   :  { %vm60_vm0 = vcmask 1040384   ;;  %s1917_s0 = inlined_call_operand.vmem [shape: f32[16,128], index: 0, kind: input, shape index: {}]   ;;  %s1918_s1 = inlined_call_operand.vmem [shape: f32[16,128], index: 1, kind: input, shape index: {}]   ;;  %s1919_s2 = inlined_call_operand.vmem [shape: f32[48,128], index: 2, kind: input, shape index: {}]   ;;  %s1920_s3 = inlined_call_operand.vmem [shape: f32[48,128], index: 3, kind: input, shape index: {}]   ;;  %s1921_s4 = inlined_call_operand.vmem [shape: f32[8,128], index: 4, kind: input, shape index: {}]   ;;  %s1922_s5 = inlined_call_operand.vmem [shape: f32[3,256], index: 5, kind: input, shape index: {}]   ;;  %s1923_s6 = inlined_call_operand.vmem [shape: f32[16,128], index: 6, kind: input, shape index: {}]   ;;  %s1924_s7 = inlined_call_operand.vmem [shape: f32[16,128], index: 7, kind: input, shape index: {}]   ;;  %s1925_s8 = inlined_call_operand.vmem [shape: f32[216,128], index: 8, kind: input, shape index: {}]   ;;  %s1926_s9 = inlined_call_operand.vmem [shape: f32[216,128], index: 9, kind: input, shape index: {}]   ;;  %s1927_s10 = inlined_call_operand.vmem [shape: f32[256,150], index: 10, kind: input, shape index: {}]   ;;  %s1928_s11 = inlined_call_operand.vmem [shape: f32[256,150], index: 11, kind: input, shape index: {}]   ;;  %s1929_s12 = inlined_call_operand.vmem [shape: f32[1,150], index: 12, kind: input, shape index: {}]   ;;  %s1930_s13 = inlined_call_operand.hbm [shape: f32[8], index: 13, kind: output, shape index: {}]  }
   0x1   :  { %v45_v0 = vld [vmem:[%s1917_s0] sm:$0xff]  ;;  %v46_v1 = vld [vmem:[%s1917_s0 + $0x8] sm:$0xff]  ;;  %v74_v10 = vld [vmem:[%s1919_s2 + $0x10] sm:$0xff] }
   0x2   :  { %v47_v2 = vld [vmem:[%s1918_s1] sm:$0xff]  ;;  %v48_v3 = vld [vmem:[%s1918_s1 + $0x8] sm:$0xff]  ;;  %v75_v11 = vld [vmem:[%s1919_s2 + $0x18] sm:$0xff] }
   0x3   :  { %v49_v4 = vsub.f32 %v45_v0, %v47_v2  ;;  %v120_v5 = vld [vmem:[%s1921_s4] sm:$0xff]  ;;  %v50_v7 = vsub.f32 %v46_v1, %v48_v3  ;;  %v73_v9 = vld [vmem:[%s1919_s2 + $0x8] sm:$0xff]  ;;  %v80_v19 = vld [vmem:[%s1920_s3 + $0x10] sm:$0xff] }
   0x4   :  { %v72_v6 = vld [vmem:[%s1919_s2] sm:$0xff]  ;;  %v121_v8 = vmul.f32 %v120_v5, %v120_v5  ;;  %v77_v14 = vld [vmem:[%s1919_s2 + $0x28] sm:$0xff]  ;;  %v81_v20 = vld [vmem:[%s1920_s3 + $0x18] sm:$0xff]  ;;  %v86_v25 = vsub.f32 %v74_v10, %v80_v19 }
   0x5   :  { %v51_v12 = vand.u32 2147483647, %v49_v4  ;;  %v76_v13 = vld [vmem:[%s1919_s2 + $0x20] sm:$0xff]  ;;  %v52_v16 = vand.u32 2147483647, %v50_v7  ;;  %v79_v18 = vld [vmem:[%s1920_s3 + $0x8] sm:$0xff]  ;;  %v87_v26 = vsub.f32 %v75_v11, %v81_v20 }
   0x6   :  { %v78_v15 = vld [vmem:[%s1920_s3] sm:$0xff]  ;;  %v122_v17 = vrot.slane %v121_v8, 4  ;;  %v83_v23 = vld [vmem:[%s1920_s3 + $0x28] sm:$0xff]  ;;  %v85_v24 = vsub.f32 %v73_v9, %v79_v18  ;;  %v92_v35 = vand.u32 2147483647, %v86_v25 }
   0x7   :  { %v84_v21 = vsub.f32 %v72_v6, %v78_v15  ;;  %v82_v22 = vld [vmem:[%s1920_s3 + $0x20] sm:$0xff]  ;;  %v53_v28 = vadd.f32 %v52_v16, %v51_v12  ;;  %v89_v39 = vsub.f32 %v77_v14, %v83_v23  ;;  %v93_v40 = vand.u32 2147483647, %v87_v26  ;;  %v186_v45 = vld [vmem:[%s1923_s6 + $0x8] sm:$0xff] }
   0x8   :  { %v139_v27 = vld [vmem:[%s1922_s5] ss:$4 sm:$0x3]  ;;  %v123_v29 = vadd.f32 %v122_v17, %v121_v8  ;;  %v88_v30 = vsub.f32 %v76_v13, %v82_v22  ;;  %v850_v31 = vld [vmem:[%s1922_s5 + $0x1] ss:$4 sm:$0x3]  ;;  %v159_v13 = vlaneseq }
   0x9   :  { %v851_v32 = vld [vmem:[%s1922_s5 + $0x2] ss:$4 sm:$0x3]  ;;  %v90_v33 = vand.u32 2147483647, %v84_v21  ;;  %v144_v36 = vmul.f32 %v139_v27, %v139_v27  ;;  %v54_v37 = vrot.slane %v53_v28, 4  ;;  %v145_v42 = vmul.f32 %v850_v31, %v850_v31 }
   0xa   :  { %v91_v34 = vand.u32 2147483647, %v85_v24  ;;  %v124_v38 = vrot.slane %v123_v29, 2  ;;  %v147_v43 = vmul.f32 %v851_v32, %v851_v32  ;;  %v185_v44 = vld [vmem:[%s1923_s6] sm:$0xff]  ;;  %v94_v48 = vand.u32 2147483647, %v88_v30 }
   0xb   :  { %v55_v46 = vadd.f32 %v54_v37, %v53_v28  ;;  %v187_v49 = vld [vmem:[%s1924_s7] sm:$0xff]  ;;  %v188_v50 = vld [vmem:[%s1924_s7 + $0x8] sm:$0xff]  ;;  %v146_v52 = vadd.f32 %v145_v42, %v144_v36  ;;  %v95_v57 = vand.u32 2147483647, %v89_v39  ;;  %v1030_v23 = vshrl.u32 %v159_v13, 7  ;;  %v213_v31 = vld [vmem:[%s1925_s8 + $0x10] sm:$0xff] }
   0xc   :  { %v96_v41 = vadd.f32 %v91_v34, %v90_v33  ;;  %v125_v47 = vadd.f32 %v124_v38, %v123_v29  ;;  %v189_v53 = vsub.f32 %v185_v44, %v187_v49  ;;  %v190_v54 = vsub.f32 %v186_v45, %v188_v50  ;;  %v211_v21 = vld [vmem:[%s1925_s8] sm:$0xff]  ;;  %v212_v24 = vld [vmem:[%s1925_s8 + $0x8] sm:$0xff]  ;;  %v240_v32 = vld [vmem:[%s1926_s9 + $0x10] sm:$0xff] }
   0xd   :  { %v56_v55 = vrot.slane %v55_v46, 2  ;;  %v148_v59 = vadd.f32 %v147_v43, %v146_v52  ;;  %v238_v25 = vld [vmem:[%s1926_s9] sm:$0xff]  ;;  %v239_v26 = vld [vmem:[%s1926_s9 + $0x8] sm:$0xff]  ;;  %v161_v37 = vsub.s32 0, %v1030_v23  ;;  %v165_v38 = vsub.s32 1, %v1030_v23  ;;  %v214_v39 = vld [vmem:[%s1925_s8 + $0x18] sm:$0xff] }
   0xe   :  { %v97_v51 = vadd.f32 %v96_v41, %v92_v35  ;;  %v126_v56 = vrot.slane %v125_v47, 1  ;;  %v191_v60 = vmul.f32 %v189_v53, %v189_v53  ;;  %v192_v61 = vmul.f32 %v190_v54, %v190_v54  ;;  %v215_v45 = vld [vmem:[%s1925_s8 + $0x20] sm:$0xff]  ;;  %v216_v52 = vld [vmem:[%s1925_s8 + $0x28] sm:$0xff]  ;;  %v221_v13 = vld [vmem:[%s1925_s8 + $0x50] sm:$0xff] }
   0xf   :  { %v57_v62 = vadd.f32 %v56_v55, %v55_v46  ;;  %868 = vrsqrt.f32 %v148_v59  ;;  %vm151_vm1 = vcmp.eq.f32.partialorder %v148_v59, inf  ;;  %v154_v17 = vand.u32 2147483648, %v148_v59  ;;  %v242_v46 = vld [vmem:[%s1926_s9 + $0x20] sm:$0xff]  ;;  %v243_v53 = vld [vmem:[%s1926_s9 + $0x28] sm:$0xff] }
  0x10   :  { %v98_v58 = vadd.f32 %v97_v51, %v93_v40  ;;  %v127_v63 = vadd.f32 %v126_v56, %v125_v47  ;;  %v193_v3 = vadd.f32 %v192_v61, %v191_v60  ;;  %vm153_vm2 = vcmp.eq.f32.partialorder %v148_v59, 0.0  ;;  %v241_v40 = vld [vmem:[%s1926_s9 + $0x18] sm:$0xff] }
  0x11   :  { %v58_v1 = vrot.slane %v57_v62, 1  ;;  %v265_v34 = vsub.f32 %v211_v21, %v238_v25  ;;  %v266_v35 = vsub.f32 %v212_v24, %v239_v26  ;;  %v267_v42 = vsub.f32 %v213_v31, %v240_v32  ;;  %v223_v24 = vld [vmem:[%s1925_s8 + $0x60] sm:$0xff] }
  0x12   :  { %v99_v0 = vadd.f32 %v98_v58, %v94_v48  ;;  %v128_v2 = vsel %vm60_vm0, %v127_v63, 0.0  ;;  %v194_v6 = vrot.slane %v193_v3, 4  ;;  %v268_v47 = vsub.f32 %v214_v39, %v241_v40  ;;  %v244_v58 = vld [vmem:[%s1926_s9 + $0x30] sm:$0xff]  ;;  %v245_v63 = vld [vmem:[%s1926_s9 + $0x38] sm:$0xff]  ;;  %v250_v25 = vld [vmem:[%s1926_s9 + $0x60] sm:$0xff] }
  0x13   :  { %129 = vadd.xlane.f32.xlu1 %v128_v2  ;;  %v59_v5 = vadd.f32 %v58_v1, %v57_v62  ;;  %v292_v48 = vmul.f32 %v265_v34, %v265_v34  ;;  %v293_v49 = vmul.f32 %v266_v35, %v266_v35  ;;  %v269_v55 = vsub.f32 %v215_v45, %v242_v46  ;;  %v218_v62 = vld [vmem:[%s1925_s8 + $0x38] sm:$0xff]  ;;  %v225_v34 = vld [vmem:[%s1925_s8 + $0x70] sm:$0xff]  ;;  %v227_v46 = vld [vmem:[%s1925_s8 + $0x80] sm:$0xff] }
  0x14   :  { %v100_v4 = vadd.f32 %v99_v0, %v95_v57  ;;  %v195_v9 = vadd.f32 %v194_v6, %v193_v3  ;;  %v294_v56 = vmul.f32 %v267_v42, %v267_v42  ;;  %v217_v57 = vld [vmem:[%s1925_s8 + $0x30] sm:$0xff]  ;;  %v295_v60 = vmul.f32 %v268_v47, %v268_v47  ;;  %v219_v3 = vld [vmem:[%s1925_s8 + $0x40] sm:$0xff]  ;;  %v253_v42 = vld [vmem:[%s1926_s9 + $0x78] sm:$0xff] }
  0x15   :  { %v61_v8 = vsel %vm60_vm0, %v59_v5, 0.0  ;;  %v319_v61 = vadd.f32 %v293_v49, %v292_v48  ;;  %v271_v0 = vsub.f32 %v217_v57, %v244_v58  ;;  %v296_v1 = vmul.f32 %v269_v55, %v269_v55  ;;  %v252_v35 = vld [vmem:[%s1926_s9 + $0x70] sm:$0xff]  ;;  %v254_v47 = vld [vmem:[%s1926_s9 + $0x80] sm:$0xff] }
  0x16   :  { %v101_v7 = vrot.slane %v100_v4, 4  ;;  %62 = vadd.xlane.f32.xlu0 %v61_v8  ;;  %v196_v11 = vrot.slane %v195_v9, 2  ;;  %v272_v5 = vsub.f32 %v218_v62, %v245_v63  ;;  %v220_v8 = vld [vmem:[%s1925_s8 + $0x48] sm:$0xff]  ;;  %v277_v31 = vsub.f32 %v223_v24, %v250_v25  ;;  %v256_v57 = vld [vmem:[%s1926_s9 + $0x90] sm:$0xff]  ;;  %v257_v62 = vld [vmem:[%s1926_s9 + $0x98] sm:$0xff] }
  0x17   :  { %v320_v2 = vadd.f32 %v319_v61, %v294_v56  ;;  %v229_v56 = vld [vmem:[%s1925_s8 + $0x90] sm:$0xff]  ;;  %v230_v61 = vld [vmem:[%s1925_s8 + $0x98] sm:$0xff] }
  0x18   :  { %v102_v10 = vadd.f32 %v101_v7, %v100_v4  ;;  %v197_v14 = vadd.f32 %v196_v11, %v195_v9  ;;  %v246_v4 = vld [vmem:[%s1926_s9 + $0x40] sm:$0xff]  ;;  %v247_v9 = vld [vmem:[%s1926_s9 + $0x48] sm:$0xff]  ;;  %v298_v11 = vmul.f32 %v271_v0, %v271_v0  ;;  %v283_v63 = vsub.f32 %v229_v56, %v256_v57 }
  0x19   :  { %v869_v15 = vpop.eup %868  ;;  %v321_v7 = vadd.f32 %v320_v2, %v295_v60  ;;  %v231_v2 = vld [vmem:[%s1925_s8 + $0xa0] sm:$0xff] }
  0x1a   :  { %v103_v12 = vrot.slane %v102_v10, 2  ;;  %v150_v18 = vmul.f32 %v869_v15, %v148_v59  ;;  %v198_v19 = vrot.slane %v197_v14, 1  ;;  %v274_v15 = vsub.f32 %v220_v8, %v247_v9  ;;  %v259_v8 = vld [vmem:[%s1926_s9 + $0xa8] sm:$0xff] }
  0x1c   :  { %v104_v16 = vadd.f32 %v103_v12, %v102_v10  ;;  %v152_v22 = vsel %vm151_vm1, %v148_v59, %v150_v18  ;;  %v199_v29 = vadd.f32 %v198_v19, %v197_v14  ;;  %v270_v59 = vsub.f32 %v216_v52, %v243_v53  ;;  %v248_v14 = vld [vmem:[%s1926_s9 + $0x50] sm:$0xff]  ;;  %v222_v18 = vld [vmem:[%s1925_s8 + $0x58] sm:$0xff]  ;;  %v255_v52 = vld [vmem:[%s1926_s9 + $0x88] sm:$0xff] }
  0x1d   :  { %v155_v28 = vsel %vm153_vm2, %v154_v17, %v152_v22  ;;  %v273_v10 = vsub.f32 %v219_v3, %v246_v4  ;;  %v322_v12 = vadd.f32 %v321_v7, %v296_v1  ;;  %v249_v19 = vld [vmem:[%s1926_s9 + $0x58] sm:$0xff]  ;;  %v281_v53 = vsub.f32 %v227_v46, %v254_v47  ;;  %v258_v3 = vld [vmem:[%s1926_s9 + $0xa0] sm:$0xff]  ;;  %v232_v7 = vld [vmem:[%s1925_s8 + $0xa8] sm:$0xff] }
  0x1e   :  { %v105_v20 = vrot.slane %v104_v16, 1  ;;  %v852_v30 = vadd.f32 -1.0, %v155_v28  ;;  %v200_v41 = vsel %vm60_vm0, %v199_v29, 0.0  ;;  %v297_v6 = vmul.f32 %v270_v59, %v270_v59  ;;  %v224_v29 = vld [vmem:[%s1925_s8 + $0x68] sm:$0xff] }
  0x1f   :  { %v300_v21 = vmul.f32 %v273_v10, %v273_v10  ;;  %v276_v26 = vsub.f32 %v222_v18, %v249_v19  ;;  %v308_v0 = vmul.f32 %v281_v53, %v281_v53  ;;  %v284_v4 = vsub.f32 %v230_v61, %v257_v62 }
  0x20   :  { %v106_v27 = vadd.f32 %v105_v20, %v104_v16  ;;  %v157_v36 = vmul.f32 %v852_v30, %v852_v30  ;;  %v299_v16 = vmul.f32 %v272_v5, %v272_v5  ;;  %v323_v17 = vadd.f32 %v322_v12, %v297_v6  ;;  %v251_v30 = vld [vmem:[%s1926_s9 + $0x68] sm:$0xff]  ;;  %v233_v12 = vld [vmem:[%s1925_s8 + $0xb0] sm:$0xff] }
  0x21   :  { %v275_v20 = vsub.f32 %v221_v13, %v248_v14  ;;  %v303_v39 = vmul.f32 %v276_v26, %v276_v26  ;;  %v285_v9 = vsub.f32 %v231_v2, %v258_v3  ;;  %v310_v10 = vmul.f32 %v283_v63, %v283_v63  ;;  %v260_v13 = vld [vmem:[%s1926_s9 + $0xb0] sm:$0xff] }
  0x22   :  { %v107_v33 = vsel %vm60_vm0, %v106_v27, 0.0  ;;  %v162_v43 = vrot.slane %v157_v36, %v161_v37  ;;  %v166_v44 = vrot.slane %v157_v36, %v165_v38  ;;  %v324_v22 = vadd.f32 %v323_v17, %v298_v11 }
  0x23   :  { %108 = vadd.xlane.f32.xlu0 %v107_v33  ;;  %v301_v27 = vmul.f32 %v274_v15, %v274_v15  ;;  %v302_v32 = vmul.f32 %v275_v20, %v275_v20  ;;  %v278_v36 = vsub.f32 %v224_v29, %v251_v30  ;;  %v286_v14 = vsub.f32 %v232_v7, %v259_v8 }
  0x24   :  { %v169_v50 = vsel %vm60_vm0, %v162_v43, 0.0  ;;  %v170_v51 = vsel %vm60_vm0, %v166_v44, 0.0  ;;  %v325_v28 = vadd.f32 %v324_v22, %v299_v16  ;;  %v279_v43 = vsub.f32 %v225_v34, %v252_v35 }
  0x25   :  { %v171_v54 = vadd.f32 %v170_v51, %v169_v50  ;;  %v304_v44 = vmul.f32 %v277_v31, %v277_v31  ;;  %v305_v49 = vmul.f32 %v278_v36, %v278_v36  ;;  %v228_v51 = vld [vmem:[%s1925_s8 + $0x88] sm:$0xff]  ;;  %v311_v15 = vmul.f32 %v284_v4, %v284_v4 }
  0x26   :  { %v326_v33 = vadd.f32 %v325_v28, %v300_v21  ;;  %v282_v58 = vsub.f32 %v228_v51, %v255_v52 }
  0x27   :  { %201 = vadd.xlane.f32.xlu0 %v200_v41  ;;  %172 = vadd.xlane.f32.xlu1 %v171_v54  ;;  %v226_v41 = vld [vmem:[%s1925_s8 + $0x78] sm:$0xff]  ;;  %v306_v54 = vmul.f32 %v279_v43, %v279_v43 }
  0x28   :  { %v327_v40 = vadd.f32 %v326_v33, %v301_v27  ;;  %v280_v48 = vsub.f32 %v226_v41, %v253_v42  ;;  %v309_v5 = vmul.f32 %v282_v58, %v282_v58 }
  0x2a   :  { %v328_v45 = vadd.f32 %v327_v40, %v302_v32  ;;  %v307_v59 = vmul.f32 %v280_v48, %v280_v48 }
  0x2c   :  { %v329_v50 = vadd.f32 %v328_v45, %v303_v39 }
  0x2e   :  { %v330_v55 = vadd.f32 %v329_v50, %v304_v44 }
  0x30   :  { %v331_v60 = vadd.f32 %v330_v55, %v305_v49 }
  0x32   :  { %v332_v1 = vadd.f32 %v331_v60, %v306_v54 }
  0x34   :  { %v333_v6 = vadd.f32 %v332_v1, %v307_v59 }
  0x36   :  { %v334_v11 = vadd.f32 %v333_v6, %v308_v0 }
  0x38   :  { %v335_v16 = vadd.f32 %v334_v11, %v309_v5 }
  0x39   :  { %18 = vsyncpa [#allocation3], 0  ;;  %v234_v17 = vld [vmem:[%s1925_s8 + $0xb8] sm:$0xff]  ;;  %v287_v19 = vsub.f32 %v233_v12, %v260_v13  ;;  %v312_v20 = vmul.f32 %v285_v9, %v285_v9  ;;  %v235_v22 = vld [vmem:[%s1925_s8 + $0xc0] sm:$0xff]  ;;  %v313_v26 = vmul.f32 %v286_v14, %v286_v14  ;;  %vm731_vm3 = vcmask 179200   ;;  %s870_s20 = scalar_lea.hbm %s1930_s13, 16 }
  0x3a   :  { %v261_v18 = vld [vmem:[%s1926_s9 + $0xb8] sm:$0xff]  ;;  %v336_v21 = vadd.f32 %v335_v16, %v310_v10  ;;  %v262_v24 = vld [vmem:[%s1926_s9 + $0xc0] sm:$0xff]  ;;  %v236_v28 = vld [vmem:[%s1925_s8 + $0xc8] sm:$0xff]  ;;  %vm802_vm4 = vcmask 172032   ;;  %p871_p0 = scmp.ne.s32.totalorder %s1930_s13, %s870_s20  ;;  %p874_p1 = scmp.lt.u32.totalorder %s870_s20, %s1930_s13 }
  0x3b   :  { %v288_v25 = vsub.f32 %v234_v17, %v261_v18  ;;  %v263_v29 = vld [vmem:[%s1926_s9 + $0xc8] sm:$0xff]  ;;  %v289_v30 = vsub.f32 %v235_v22, %v262_v24  ;;  %v314_v31 = vmul.f32 %v287_v19, %v287_v19  ;;  %v237_v33 = vld [vmem:[%s1925_s8 + $0xd0] sm:$0xff]  ;;  %v554_v43 = vld [vmem:[%s1929_s12] sm:$0x3] }
  0x3c   :  { %v337_v27 = vadd.f32 %v336_v21, %v311_v15  ;;  %v264_v34 = vld [vmem:[%s1926_s9 + $0xd0] sm:$0xff]  ;;  %v290_v35 = vsub.f32 %v236_v28, %v263_v29  ;;  %v362_v46 = vld [vmem:[%s1927_s10] sm:$0xff]  ;;  %v363_v47 = vld [vmem:[%s1927_s10 + $0x8] sm:$0xff]  ;;  %v1278_v9 = vrot.slane %v554_v43, %v161_v37  ;;  %v1282_v10 = vrot.slane %v554_v43, %v165_v38  ;;  %p876_p2 = pnand %p874_p1, %p871_p0 }
  0x3d   :  { %v315_v36 = vmul.f32 %v288_v25, %v288_v25  ;;  %v291_v40 = vsub.f32 %v237_v33, %v264_v34  ;;  %v316_v41 = vmul.f32 %v289_v30, %v289_v30  ;;  %v364_v48 = vld [vmem:[%s1927_s10 + $0x10] sm:$0xff]  ;;  %v365_v49 = vld [vmem:[%s1927_s10 + $0x18] sm:$0xff]  ;;  %v366_v50 = vld [vmem:[%s1927_s10 + $0x20] sm:$0xff] }
  0x3e   :  { %v338_v32 = vadd.f32 %v337_v27, %v312_v20  ;;  %v317_v44 = vmul.f32 %v290_v35, %v290_v35  ;;  %v367_v53 = vld [vmem:[%s1927_s10 + $0x28] sm:$0xff]  ;;  %v368_v54 = vld [vmem:[%s1927_s10 + $0x30] sm:$0xff]  ;;  %v369_v55 = vld [vmem:[%s1927_s10 + $0x38] sm:$0xff] }
  0x3f   :  { %v318_v51 = vmul.f32 %v291_v40, %v291_v40  ;;  %v370_v56 = vld [vmem:[%s1927_s10 + $0x40] sm:$0xff]  ;;  %v427_v58 = vld [vmem:[%s1928_s11 + $0x8] sm:$0xff]  ;;  %v428_v59 = vld [vmem:[%s1928_s11 + $0x10] sm:$0xff] }
  0x40   :  { %v339_v39 = vadd.f32 %v338_v32, %v313_v26  ;;  %v426_v57 = vld [vmem:[%s1928_s11] sm:$0xff]  ;;  %v371_v60 = vld [vmem:[%s1927_s10 + $0x48] sm:$0xff]  ;;  %v372_v61 = vld [vmem:[%s1927_s10 + $0x50] sm:$0xff]  ;;  %v491_v15 = vsub.f32 %v363_v47, %v427_v58  ;;  %v1320_v24 = vsub.f32 %v364_v48, %v428_v59 }
  0x41   :  { %v373_v62 = vld [vmem:[%s1927_s10 + $0x58] sm:$0xff]  ;;  %v430_v0 = vld [vmem:[%s1928_s11 + $0x20] sm:$0xff]  ;;  %v431_v1 = vld [vmem:[%s1928_s11 + $0x28] sm:$0xff]  ;;  %v490_v14 = vsub.f32 %v362_v46, %v426_v57 }
  0x42   :  { %v340_v42 = vadd.f32 %v339_v39, %v314_v31  ;;  %v429_v63 = vld [vmem:[%s1928_s11 + $0x18] sm:$0xff]  ;;  %v374_v3 = vld [vmem:[%s1927_s10 + $0x60] sm:$0xff]  ;;  %v375_v4 = vld [vmem:[%s1927_s10 + $0x68] sm:$0xff]  ;;  %v1324_v26 = vsub.f32 %v366_v50, %v430_v0  ;;  %v1344_v33 = vsub.f32 %v367_v53, %v431_v1 }
  0x43   :  { %v376_v5 = vld [vmem:[%s1927_s10 + $0x70] sm:$0xff]  ;;  %v433_v7 = vld [vmem:[%s1928_s11 + $0x38] sm:$0xff]  ;;  %v434_v8 = vld [vmem:[%s1928_s11 + $0x40] sm:$0xff]  ;;  %v1322_v25 = vsub.f32 %v365_v49, %v429_v63  ;;  %v1400_v58 = vmul.f32 %v490_v14, %v490_v14 }
  0x44   :  { %v341_v45 = vadd.f32 %v340_v42, %v315_v36  ;;  %v432_v6 = vld [vmem:[%s1928_s11 + $0x30] sm:$0xff]  ;;  %v377_v11 = vld [vmem:[%s1927_s10 + $0x78] sm:$0xff]  ;;  %v378_v12 = vld [vmem:[%s1927_s10 + $0x80] sm:$0xff]  ;;  %v1348_v35 = vsub.f32 %v369_v55, %v433_v7  ;;  %v1350_v36 = vsub.f32 %v370_v56, %v434_v8 }
  0x45   :  { %v379_v13 = vld [vmem:[%s1927_s10 + $0x88] sm:$0xff]  ;;  %v436_v23 = vld [vmem:[%s1928_s11 + $0x50] sm:$0xff]  ;;  %v437_v38 = vld [vmem:[%s1928_s11 + $0x58] sm:$0xff]  ;;  %v1346_v34 = vsub.f32 %v368_v54, %v432_v6 }
  0x46   :  { %v342_v52 = vadd.f32 %v341_v45, %v316_v41  ;;  %v435_v37 = vld [vmem:[%s1928_s11 + $0x48] sm:$0xff]  ;;  %v380_v17 = vld [vmem:[%s1927_s10 + $0x90] sm:$0xff]  ;;  %v381_v18 = vld [vmem:[%s1927_s10 + $0x98] sm:$0xff]  ;;  %v1372_v47 = vsub.f32 %v372_v61, %v436_v23  ;;  %v1374_v48 = vsub.f32 %v373_v62, %v437_v38  ;;  %v556_v23 = vmul.f32 %v491_v15, %v491_v15 }
  0x47   :  { %v382_v19 = vld [vmem:[%s1927_s10 + $0xa0] sm:$0xff]  ;;  %v439_v21 = vld [vmem:[%s1928_s11 + $0x68] sm:$0xff]  ;;  %v440_v22 = vld [vmem:[%s1928_s11 + $0x70] sm:$0xff]  ;;  %v1370_v46 = vsub.f32 %v371_v60, %v435_v37 }
  0x48   :  { %v343_v2 = vadd.f32 %v342_v52, %v317_v44  ;;  %v438_v20 = vld [vmem:[%s1928_s11 + $0x60] sm:$0xff]  ;;  %v383_v27 = vld [vmem:[%s1927_s10 + $0xa8] sm:$0xff]  ;;  %v384_v28 = vld [vmem:[%s1927_s10 + $0xb0] sm:$0xff]  ;;  %v1396_v56 = vsub.f32 %v375_v4, %v439_v21  ;;  %v1398_v57 = vsub.f32 %v376_v5, %v440_v22 }
  0x49   :  { %v385_v29 = vld [vmem:[%s1927_s10 + $0xb8] sm:$0xff]  ;;  %v442_v31 = vld [vmem:[%s1928_s11 + $0x80] sm:$0xff]  ;;  %v443_v32 = vld [vmem:[%s1928_s11 + $0x88] sm:$0xff]  ;;  %v1394_v55 = vsub.f32 %v374_v3, %v438_v20 }
  0x4a   :  { %v344_v16 = vadd.f32 %v343_v2, %v318_v51  ;;  %v441_v30 = vld [vmem:[%s1928_s11 + $0x78] sm:$0xff]  ;;  %v386_v40 = vld [vmem:[%s1927_s10 + $0xc0] sm:$0xff]  ;;  %v387_v41 = vld [vmem:[%s1927_s10 + $0xc8] sm:$0xff]  ;;  %v1419_v2 = vsub.f32 %v378_v12, %v442_v31  ;;  %v1421_v3 = vsub.f32 %v379_v13, %v443_v32 }
  0x4b   :  { %v388_v42 = vld [vmem:[%s1927_s10 + $0xd0] sm:$0xff]  ;;  %v445_v44 = vld [vmem:[%s1928_s11 + $0x98] sm:$0xff]  ;;  %v446_v45 = vld [vmem:[%s1928_s11 + $0xa0] sm:$0xff]  ;;  %v1417_v1 = vsub.f32 %v377_v11, %v441_v30 }
  0x4c   :  { %v345_v39 = vrot.slane %v344_v16, 4  ;;  %v444_v43 = vld [vmem:[%s1928_s11 + $0x90] sm:$0xff]  ;;  %v389_v49 = vld [vmem:[%s1927_s10 + $0xd8] sm:$0xff]  ;;  %v390_v50 = vld [vmem:[%s1927_s10 + $0xe0] sm:$0xff]  ;;  %v1443_v13 = vsub.f32 %v381_v18, %v445_v44  ;;  %v1445_v37 = vsub.f32 %v382_v19, %v446_v45  ;;  %v558_v45 = vmul.f32 %v1322_v25, %v1322_v25 }
  0x4d   :  { %v391_v51 = vld [vmem:[%s1927_s10 + $0xe8] sm:$0xff]  ;;  %v448_v53 = vld [vmem:[%s1928_s11 + $0xb0] sm:$0xff]  ;;  %v449_v54 = vld [vmem:[%s1928_s11 + $0xb8] sm:$0xff]  ;;  %v1441_v12 = vsub.f32 %v380_v17, %v444_v43 }
  0x4e   :  { %v447_v52 = vld [vmem:[%s1928_s11 + $0xa8] sm:$0xff]  ;;  %v346_v59 = vadd.f32 %v345_v39, %v344_v16  ;;  %v392_v60 = vld [vmem:[%s1927_s10 + $0xf0] sm:$0xff]  ;;  %v393_v61 = vld [vmem:[%s1927_s10 + $0xf8] sm:$0xff]  ;;  %v1458_v18 = vsub.f32 %v384_v28, %v448_v53  ;;  %v1460_v19 = vsub.f32 %v385_v29, %v449_v54  ;;  %v557_v29 = vmul.f32 %v1320_v24, %v1320_v24 }
  0x4f   :  { %v450_v62 = vld [vmem:[%s1928_s11 + $0xc0] sm:$0xff]  ;;  %v451_v63 = vld [vmem:[%s1928_s11 + $0xc8] sm:$0xff]  ;;  %v452_v0 = vld [vmem:[%s1928_s11 + $0xd0] sm:$0xff]  ;;  %v1456_v17 = vsub.f32 %v383_v27, %v447_v52  ;;  %v560_v52 = vmul.f32 %v1344_v33, %v1344_v33 }
  0x50   :  { %v394_v4 = vld [vmem:[%s1927_s10 + $0x100] sm:$0xff]  ;;  %v395_v5 = vld [vmem:[%s1927_s10 + $0x108] sm:$0xff]  ;;  %v396_v6 = vld [vmem:[%s1927_s10 + $0x110] sm:$0xff]  ;;  %v347_v38 = vrot.slane %v346_v59, 2  ;;  %v1471_v30 = vsub.f32 %v386_v40, %v450_v62  ;;  %v1473_v27 = vsub.f32 %v387_v41, %v451_v63  ;;  %v1475_v28 = vsub.f32 %v388_v42, %v452_v0 }
  0x51   :  { %v453_v7 = vld [vmem:[%s1928_s11 + $0xd8] sm:$0xff]  ;;  %v454_v8 = vld [vmem:[%s1928_s11 + $0xe0] sm:$0xff]  ;;  %v455_v11 = vld [vmem:[%s1928_s11 + $0xe8] sm:$0xff]  ;;  %v559_v0 = vmul.f32 %v1324_v26, %v1324_v26  ;;  %v635_v26 = vmul.f32 %v1282_v10, %v560_v52 }
  0x52   :  { %v397_v14 = vld [vmem:[%s1927_s10 + $0x118] sm:$0xff]  ;;  %v456_v16 = vld [vmem:[%s1928_s11 + $0xf0] sm:$0xff]  ;;  %v458_v15 = vld [vmem:[%s1928_s11 + $0x100] sm:$0xff]  ;;  %v348_v31 = vadd.f32 %v347_v38, %v346_v59  ;;  %v1488_v41 = vsub.f32 %v389_v49, %v453_v7  ;;  %v1490_v42 = vsub.f32 %v390_v50, %v454_v8  ;;  %v1492_v43 = vsub.f32 %v391_v51, %v455_v11 }
  0x53   :  { %v457_v20 = vld [vmem:[%s1928_s11 + $0xf8] sm:$0xff]  ;;  %v459_v21 = vld [vmem:[%s1928_s11 + $0x108] sm:$0xff]  ;;  %v460_v22 = vld [vmem:[%s1928_s11 + $0x110] sm:$0xff]  ;;  %v1494_v24 = vsub.f32 %v392_v60, %v456_v16  ;;  %v1511_v54 = vsub.f32 %v394_v4, %v458_v15  ;;  %v562_v4 = vmul.f32 %v1348_v35, %v1348_v35  ;;  %v564_v7 = vmul.f32 %v1370_v46, %v1370_v46 }
  0x54   :  { %v398_v32 = vld [vmem:[%s1927_s10 + $0x120] sm:$0xff]  ;;  %v461_v39 = vld [vmem:[%s1928_s11 + $0x118] sm:$0xff]  ;;  %v1496_v44 = vsub.f32 %v393_v61, %v457_v20  ;;  %v349_v53 = vrot.slane %v348_v31, 1  ;;  %v399_v49 = vld [vmem:[%s1927_s10 + $0x128] sm:$0xff]  ;;  %v1513_v59 = vsub.f32 %v395_v5, %v459_v21  ;;  %v1515_v25 = vsub.f32 %v396_v6, %v460_v22 }
  0x55   :  { %v462_v40 = vld [vmem:[%s1928_s11 + $0x120] sm:$0xff]  ;;  %v400_v50 = vld [vmem:[%s1927_s10 + $0x130] sm:$0xff]  ;;  %v401_v51 = vld [vmem:[%s1927_s10 + $0x138] sm:$0xff]  ;;  %v1526_v62 = vsub.f32 %v397_v14, %v461_v39  ;;  %v561_v6 = vmul.f32 %v1346_v34, %v1346_v34  ;;  %v630_v8 = vmul.f32 %v1278_v9, %v1400_v58  ;;  %v631_v11 = vmul.f32 %v1282_v10, %v556_v23 }
  0x56   :  { %v463_v33 = vld [vmem:[%s1928_s11 + $0x128] sm:$0xff]  ;;  %v464_v60 = vld [vmem:[%s1928_s11 + $0x130] sm:$0xff]  ;;  %v465_v61 = vld [vmem:[%s1928_s11 + $0x138] sm:$0xff]  ;;  %v1528_v63 = vsub.f32 %v398_v32, %v462_v40  ;;  %v350_v5 = vadd.f32 %v349_v53, %v348_v31  ;;  %v632_v38 = vmul.f32 %v1278_v9, %v557_v29  ;;  %v633_v14 = vmul.f32 %v1282_v10, %v558_v45 }
  0x57   :  { %v1545_v16 = vsub.f32 %v399_v49, %v463_v33  ;;  %v1547_v20 = vsub.f32 %v400_v50, %v464_v60  ;;  %v1549_v34 = vsub.f32 %v401_v51, %v465_v61  ;;  %v402_v46 = vld [vmem:[%s1927_s10 + $0x140] sm:$0xff]  ;;  %v563_v23 = vmul.f32 %v1350_v36, %v1350_v36  ;;  %v403_v36 = vld [vmem:[%s1927_s10 + $0x148] sm:$0xff]  ;;  %v404_v51 = vld [vmem:[%s1927_s10 + $0x150] sm:$0xff] }
  0x58   :  { %v351_v35 = vsel %vm60_vm0, %v350_v5, 0.0  ;;  %v466_v58 = vld [vmem:[%s1928_s11 + $0x140] sm:$0xff]  ;;  %v566_v15 = vmul.f32 %v1374_v48, %v1374_v48  ;;  %v634_v21 = vmul.f32 %v1278_v9, %v559_v0  ;;  %v637_v22 = vmul.f32 %v1282_v10, %v562_v4  ;;  %v467_v48 = vld [vmem:[%s1928_s11 + $0x148] sm:$0xff]  ;;  %v468_v33 = vld [vmem:[%s1928_s11 + $0x150] sm:$0xff] }
  0x59   :  { %352 = vadd.xlane.f32.xlu1 %v351_v35  ;;  %v565_v29 = vmul.f32 %v1372_v47, %v1372_v47  ;;  %v568_v31 = vmul.f32 %v1396_v56, %v1396_v56  ;;  %v636_v32 = vmul.f32 %v1278_v9, %v561_v6  ;;  %v639_v39 = vmul.f32 %v1282_v10, %v564_v7  ;;  %v405_v7 = vld [vmem:[%s1927_s10 + $0x158] sm:$0xff] }
  0x5a   :  { %v694_v40 = vadd.f32 %v632_v38, %v630_v8  ;;  %v732_v45 = vsel %vm731_vm3, %v631_v11, 0.0  ;;  %v733_v47 = vsel %vm731_vm3, %v633_v14, 0.0  ;;  %v735_v52 = vsel %vm731_vm3, %v635_v26, 0.0  ;;  %v469_v8 = vld [vmem:[%s1928_s11 + $0x158] sm:$0xff] }
  0x5b   :  { %v1578_v56 = vsub.f32 %v402_v46, %v466_v58  ;;  %v567_v53 = vmul.f32 %v1394_v55, %v1394_v55  ;;  %v570_v49 = vmul.f32 %v1417_v1, %v1417_v1  ;;  %v734_v50 = vadd.f32 %v733_v47, %v732_v45  ;;  %v406_v58 = vld [vmem:[%s1927_s10 + $0x160] sm:$0xff] }
  0x5c   :  { %v638_v60 = vmul.f32 %v1278_v9, %v563_v23  ;;  %v641_v61 = vmul.f32 %v1282_v10, %v566_v15  ;;  %v695_v0 = vadd.f32 %v694_v40, %v634_v21  ;;  %v737_v4 = vsel %vm731_vm3, %v637_v22, 0.0  ;;  %v470_v23 = vld [vmem:[%s1928_s11 + $0x160] sm:$0xff] }
  0x5d   :  { %v1593_v55 = vsub.f32 %v403_v36, %v467_v48  ;;  %v569_v1 = vmul.f32 %v1398_v57, %v1398_v57  ;;  %v572_v5 = vmul.f32 %v1421_v3, %v1421_v3  ;;  %v736_v6 = vadd.f32 %v735_v52, %v734_v50  ;;  %v471_v36 = vld [vmem:[%s1928_s11 + $0x168] sm:$0xff]  ;;  %v472_v50 = vld [vmem:[%s1928_s11 + $0x170] sm:$0xff] }
  0x5e   :  { %v640_v11 = vmul.f32 %v1278_v9, %v565_v29  ;;  %v643_v38 = vmul.f32 %v1282_v10, %v568_v31  ;;  %v696_v14 = vadd.f32 %v695_v0, %v636_v32  ;;  %v739_v26 = vsel %vm731_vm3, %v639_v39, 0.0  ;;  %v407_v39 = vld [vmem:[%s1927_s10 + $0x168] sm:$0xff] }
  0x5f   :  { %v1608_v57 = vsub.f32 %v404_v51, %v468_v33  ;;  %v571_v3 = vmul.f32 %v1419_v2, %v1419_v2  ;;  %v574_v35 = vmul.f32 %v1443_v13, %v1443_v13  ;;  %v738_v46 = vadd.f32 %v737_v4, %v736_v6 }
  0x60   :  { %v642_v15 = vmul.f32 %v1278_v9, %v567_v53  ;;  %v645_v21 = vmul.f32 %v1282_v10, %v570_v49  ;;  %v697_v22 = vadd.f32 %v696_v14, %v638_v60  ;;  %v741_v29 = vsel %vm731_vm3, %v641_v61, 0.0  ;;  %v408_v49 = vld [vmem:[%s1927_s10 + $0x170] sm:$0xff] }
  0x61   :  { %v1623_v2 = vsub.f32 %v405_v7, %v469_v8  ;;  %v573_v13 = vmul.f32 %v1441_v12, %v1441_v12  ;;  %v576_v31 = vmul.f32 %v1456_v17, %v1456_v17  ;;  %v740_v32 = vadd.f32 %v739_v26, %v738_v46  ;;  %v410_v26 = vld [vmem:[%s1927_s10 + $0x180] sm:$0xff] }
  0x62   :  { %v644_v48 = vmul.f32 %v1278_v9, %v569_v1  ;;  %v647_v40 = vmul.f32 %v1282_v10, %v572_v5  ;;  %v698_v45 = vadd.f32 %v697_v22, %v640_v11  ;;  %v743_v47 = vsel %vm731_vm3, %v643_v38, 0.0  ;;  %v409_v1 = vld [vmem:[%s1927_s10 + $0x178] sm:$0xff]  ;;  %v411_v22 = vld [vmem:[%s1927_s10 + $0x188] sm:$0xff] }
  0x63   :  { %v1638_v12 = vsub.f32 %v406_v58, %v470_v23  ;;  %v575_v17 = vmul.f32 %v1445_v37, %v1445_v37  ;;  %v578_v52 = vmul.f32 %v1460_v19, %v1460_v19  ;;  %v742_v53 = vadd.f32 %v741_v29, %v740_v32  ;;  %v473_v5 = vld [vmem:[%s1928_s11 + $0x178] sm:$0xff]  ;;  %v475_v29 = vld [vmem:[%s1928_s11 + $0x188] sm:$0xff] }
  0x64   :  { %v646_v51 = vmul.f32 %v1278_v9, %v571_v3  ;;  %v649_v33 = vmul.f32 %v1282_v10, %v574_v35  ;;  %v699_v60 = vadd.f32 %v698_v45, %v642_v15  ;;  %v745_v61 = vsel %vm731_vm3, %v645_v21, 0.0  ;;  %v474_v3 = vld [vmem:[%s1928_s11 + $0x180] sm:$0xff]  ;;  %v476_v45 = vld [vmem:[%s1928_s11 + $0x190] sm:$0xff] }
  0x65   :  { %v1653_v37 = vsub.f32 %v407_v39, %v471_v36  ;;  %v577_v19 = vmul.f32 %v1458_v18, %v1458_v18  ;;  %v580_v0 = vmul.f32 %v1473_v27, %v1473_v27  ;;  %v744_v4 = vadd.f32 %v743_v47, %v742_v53 }
  0x66   :  { %v648_v6 = vmul.f32 %v1278_v9, %v573_v13  ;;  %v651_v7 = vmul.f32 %v1282_v10, %v576_v31  ;;  %v700_v8 = vadd.f32 %v699_v60, %v644_v48  ;;  %v747_v11 = vsel %vm731_vm3, %v647_v40, 0.0  ;;  %v412_v40 = vld [vmem:[%s1927_s10 + $0x190] sm:$0xff] }
  0x67   :  { %v1668_v18 = vsub.f32 %v408_v49, %v472_v50  ;;  %v579_v27 = vmul.f32 %v1471_v30, %v1471_v30  ;;  %v582_v38 = vmul.f32 %v1488_v41, %v1488_v41  ;;  %v746_v14 = vadd.f32 %v745_v61, %v744_v4 }
  0x68   :  { %v650_v35 = vmul.f32 %v1278_v9, %v575_v17  ;;  %v653_v46 = vmul.f32 %v1282_v10, %v578_v52  ;;  %v701_v58 = vadd.f32 %v700_v8, %v646_v51  ;;  %v749_v23 = vsel %vm731_vm3, %v649_v33, 0.0  ;;  %v413_v51 = vld [vmem:[%s1927_s10 + $0x198] sm:$0xff] }
  0x69   :  { %v1683_v30 = vsub.f32 %v409_v1, %v473_v5  ;;  %v581_v41 = vmul.f32 %v1475_v28, %v1475_v28  ;;  %v584_v15 = vmul.f32 %v1492_v43, %v1492_v43  ;;  %v748_v21 = vadd.f32 %v747_v11, %v746_v14  ;;  %v477_v33 = vld [vmem:[%s1928_s11 + $0x198] sm:$0xff]  ;;  %v414_v5 = vld [vmem:[%s1927_s10 + $0x1a0] sm:$0xff] }
  0x6a   :  { %v652_v13 = vmul.f32 %v1278_v9, %v577_v19  ;;  %v655_v31 = vmul.f32 %v1282_v10, %v580_v0  ;;  %v702_v32 = vadd.f32 %v701_v58, %v648_v6  ;;  %v751_v39 = vsel %vm731_vm3, %v651_v7, 0.0  ;;  %v478_v6 = vld [vmem:[%s1928_s11 + $0x1a0] sm:$0xff] }
  0x6b   :  { %v1698_v28 = vsub.f32 %v410_v26, %v474_v3  ;;  %v583_v43 = vmul.f32 %v1490_v42, %v1490_v42  ;;  %v586_v36 = vmul.f32 %v1496_v44, %v1496_v44  ;;  %v750_v48 = vadd.f32 %v749_v23, %v748_v21  ;;  %v415_v26 = vld [vmem:[%s1927_s10 + $0x1a8] sm:$0xff]  ;;  %v416_v21 = vld [vmem:[%s1927_s10 + $0x1b0] sm:$0xff] }
  0x6c   :  { %v654_v47 = vmul.f32 %v1278_v9, %v579_v27  ;;  %v657_v17 = vmul.f32 %v1282_v10, %v582_v38  ;;  %v703_v52 = vadd.f32 %v702_v32, %v650_v35  ;;  %v753_v53 = vsel %vm731_vm3, %v653_v46, 0.0  ;;  %v479_v3 = vld [vmem:[%s1928_s11 + $0x1a8] sm:$0xff] }
  0x6d   :  { %v1713_v42 = vsub.f32 %v411_v22, %v475_v29  ;;  %v585_v44 = vmul.f32 %v1494_v24, %v1494_v24  ;;  %v588_v49 = vmul.f32 %v1513_v59, %v1513_v59  ;;  %v752_v50 = vadd.f32 %v751_v39, %v750_v48  ;;  %v480_v22 = vld [vmem:[%s1928_s11 + $0x1b0] sm:$0xff]  ;;  %v481_v48 = vld [vmem:[%s1928_s11 + $0x1b8] sm:$0xff] }
  0x6e   :  { %v656_v60 = vmul.f32 %v1278_v9, %v581_v41  ;;  %v659_v61 = vmul.f32 %v1282_v10, %v584_v15  ;;  %v704_v19 = vadd.f32 %v703_v52, %v652_v13  ;;  %v755_v0 = vsel %vm731_vm3, %v655_v31, 0.0 }
  0x6f   :  { %v1728_v24 = vsub.f32 %v412_v40, %v476_v45  ;;  %v587_v59 = vmul.f32 %v1511_v54, %v1511_v54  ;;  %v590_v4 = vmul.f32 %v1526_v62, %v1526_v62  ;;  %v754_v1 = vadd.f32 %v753_v53, %v752_v50 }
  0x70   :  { %v658_v7 = vmul.f32 %v1278_v9, %v583_v43  ;;  %v661_v8 = vmul.f32 %v1282_v10, %v586_v36  ;;  %v705_v11 = vadd.f32 %v704_v19, %v654_v47  ;;  %v757_v27 = vsel %vm731_vm3, %v657_v17, 0.0  ;;  %v417_v36 = vld [vmem:[%s1927_s10 + $0x1b8] sm:$0xff] }
  0x71   :  { %v1743_v54 = vsub.f32 %v413_v51, %v477_v33  ;;  %v589_v62 = vmul.f32 %v1515_v25, %v1515_v25  ;;  %v592_v38 = vmul.f32 %v1545_v16, %v1545_v16  ;;  %v756_v14 = vadd.f32 %v755_v0, %v754_v1  ;;  %v419_v0 = vld [vmem:[%s1927_s10 + $0x1c8] sm:$0xff] }
  0x72   :  { %v660_v35 = vmul.f32 %v1278_v9, %v585_v44  ;;  %v663_v46 = vmul.f32 %v1282_v10, %v588_v49  ;;  %v706_v58 = vadd.f32 %v705_v11, %v656_v60  ;;  %v759_v23 = vsel %vm731_vm3, %v659_v61, 0.0  ;;  %v418_v44 = vld [vmem:[%s1927_s10 + $0x1c0] sm:$0xff]  ;;  %v420_v11 = vld [vmem:[%s1927_s10 + $0x1d0] sm:$0xff] }
  0x73   :  { %v1758_v25 = vsub.f32 %v414_v5, %v478_v6  ;;  %v591_v16 = vmul.f32 %v1528_v63, %v1528_v63  ;;  %v594_v41 = vmul.f32 %v1549_v34, %v1549_v34  ;;  %v758_v15 = vadd.f32 %v757_v27, %v756_v14  ;;  %v482_v49 = vld [vmem:[%s1928_s11 + $0x1c0] sm:$0xff]  ;;  %v484_v27 = vld [vmem:[%s1928_s11 + $0x1d0] sm:$0xff] }
  0x74   :  { %v662_v29 = vmul.f32 %v1278_v9, %v587_v59  ;;  %v665_v13 = vmul.f32 %v1282_v10, %v590_v4  ;;  %v707_v31 = vadd.f32 %v706_v58, %v658_v7  ;;  %v761_v32 = vsel %vm731_vm3, %v661_v8, 0.0  ;;  %v483_v59 = vld [vmem:[%s1928_s11 + $0x1c8] sm:$0xff]  ;;  %v485_v58 = vld [vmem:[%s1928_s11 + $0x1d8] sm:$0xff] }
  0x75   :  { %v543_v63 = vsub.f32 %v415_v26, %v479_v3  ;;  %v593_v34 = vmul.f32 %v1547_v20, %v1547_v20  ;;  %v596_v39 = vmul.f32 %v1593_v55, %v1593_v55  ;;  %v760_v43 = vadd.f32 %v759_v23, %v758_v15 }
  0x76   :  { %v664_v40 = vmul.f32 %v1278_v9, %v589_v62  ;;  %v667_v45 = vmul.f32 %v1282_v10, %v592_v38  ;;  %v708_v47 = vadd.f32 %v707_v31, %v660_v35  ;;  %v763_v17 = vsel %vm731_vm3, %v663_v46, 0.0  ;;  %v421_v46 = vld [vmem:[%s1927_s10 + $0x1d8] sm:$0xff] }
  0x77   :  { %v1786_v20 = vsub.f32 %v416_v21, %v480_v22  ;;  %v595_v55 = vmul.f32 %v1578_v56, %v1578_v56  ;;  %v598_v52 = vmul.f32 %v1623_v2, %v1623_v2  ;;  %v762_v53 = vadd.f32 %v761_v32, %v760_v43 }
  0x78   :  { %v666_v50 = vmul.f32 %v1278_v9, %v591_v16  ;;  %v669_v51 = vmul.f32 %v1282_v10, %v594_v41  ;;  %v709_v33 = vadd.f32 %v708_v47, %v662_v29  ;;  %v765_v60 = vsel %vm731_vm3, %v665_v13, 0.0  ;;  %v422_v29 = vld [vmem:[%s1927_s10 + $0x1e0] sm:$0xff] }
  0x79   :  { %v545_v56 = vsub.f32 %v417_v36, %v481_v48  ;;  %v597_v2 = vmul.f32 %v1608_v57, %v1608_v57  ;;  %v600_v61 = vmul.f32 %v1653_v37, %v1653_v37  ;;  %v764_v19 = vadd.f32 %v763_v17, %v762_v53  ;;  %v486_v13 = vld [vmem:[%s1928_s11 + $0x1e0] sm:$0xff]  ;;  %v423_v48 = vld [vmem:[%s1927_s10 + $0x1e8] sm:$0xff] }
  0x7a   :  { %v668_v4 = vmul.f32 %v1278_v9, %v593_v34  ;;  %v671_v1 = vmul.f32 %v1282_v10, %v596_v39  ;;  %v710_v5 = vadd.f32 %v709_v33, %v664_v40  ;;  %v767_v6 = vsel %vm731_vm3, %v667_v45, 0.0  ;;  %v487_v40 = vld [vmem:[%s1928_s11 + $0x1e8] sm:$0xff] }
  0x7b   :  { %v546_v57 = vsub.f32 %v418_v44, %v482_v49  ;;  %v599_v37 = vmul.f32 %v1638_v12, %v1638_v12  ;;  %v602_v7 = vmul.f32 %v1683_v30, %v1683_v30  ;;  %v766_v8 = vadd.f32 %v765_v60, %v764_v19  ;;  %v425_v44 = vld [vmem:[%s1927_s10 + $0x1f8] sm:$0xff]  ;;  %v424_v19 = vld [vmem:[%s1927_s10 + $0x1f0] sm:$0xff] }
  0x7c   :  { %v670_v62 = vmul.f32 %v1278_v9, %v595_v55  ;;  %v673_v38 = vmul.f32 %v1282_v10, %v598_v52  ;;  %v711_v14 = vadd.f32 %v710_v5, %v666_v50  ;;  %v769_v26 = vsel %vm731_vm3, %v669_v51, 0.0  ;;  %v489_v49 = vld [vmem:[%s1928_s11 + $0x1f8] sm:$0xff] }
  0x7d   :  { %v547_v12 = vsub.f32 %v419_v0, %v483_v59  ;;  %v601_v30 = vmul.f32 %v1668_v18, %v1668_v18  ;;  %v604_v3 = vmul.f32 %v1713_v42, %v1713_v42  ;;  %v768_v35 = vadd.f32 %v767_v6, %v766_v8  ;;  %v488_v0 = vld [vmem:[%s1928_s11 + $0x1f0] sm:$0xff] }
  0x7e   :  { %v672_v23 = vmul.f32 %v1278_v9, %v597_v2  ;;  %v675_v16 = vmul.f32 %v1282_v10, %v600_v61  ;;  %v712_v41 = vadd.f32 %v711_v14, %v668_v4  ;;  %v771_v15 = vsel %vm731_vm3, %v671_v1, 0.0 }
  0x7f   :  { %v548_v18 = vsub.f32 %v420_v11, %v484_v27  ;;  %v603_v42 = vmul.f32 %v1698_v28, %v1698_v28  ;;  %v606_v21 = vmul.f32 %v1743_v54, %v1743_v54  ;;  %v770_v22 = vadd.f32 %v769_v26, %v768_v35 }
  0x80   :  { %v674_v31 = vmul.f32 %v1278_v9, %v599_v37  ;;  %v677_v32 = vmul.f32 %v1282_v10, %v602_v7  ;;  %v713_v34 = vadd.f32 %v712_v41, %v670_v62  ;;  %v773_v39 = vsel %vm731_vm3, %v673_v38, 0.0 }
  0x81   :  { %v549_v28 = vsub.f32 %v421_v46, %v485_v58  ;;  %v605_v54 = vmul.f32 %v1728_v24, %v1728_v24  ;;  %v608_v43 = vmul.f32 %v543_v63, %v543_v63  ;;  %v772_v36 = vadd.f32 %v771_v15, %v770_v22 }
  0x82   :  { %v676_v45 = vmul.f32 %v1278_v9, %v601_v30  ;;  %v679_v47 = vmul.f32 %v1282_v10, %v604_v3  ;;  %v714_v17 = vadd.f32 %v713_v34, %v672_v23  ;;  %v775_v55 = vsel %vm731_vm3, %v675_v16, 0.0 }
  0x83   :  { %v550_v52 = vsub.f32 %v422_v29, %v486_v13  ;;  %v607_v24 = vmul.f32 %v1758_v25, %v1758_v25  ;;  %v610_v63 = vmul.f32 %v545_v56, %v545_v56  ;;  %v774_v53 = vadd.f32 %v773_v39, %v772_v36 }
  0x84   :  { %v678_v50 = vmul.f32 %v1278_v9, %v603_v42  ;;  %v681_v51 = vmul.f32 %v1282_v10, %v606_v21  ;;  %v715_v33 = vadd.f32 %v714_v17, %v674_v31  ;;  %v777_v60 = vsel %vm731_vm3, %v677_v32, 0.0 }
  0x85   :  { %v551_v2 = vsub.f32 %v423_v48, %v487_v40  ;;  %v609_v25 = vmul.f32 %v1786_v20, %v1786_v20  ;;  %v612_v56 = vmul.f32 %v547_v12, %v547_v12  ;;  %v776_v61 = vadd.f32 %v775_v55, %v774_v53 }
  0x86   :  { %v680_v59 = vmul.f32 %v1278_v9, %v605_v54  ;;  %v683_v4 = vmul.f32 %v1282_v10, %v608_v43  ;;  %v716_v1 = vadd.f32 %v715_v33, %v676_v45  ;;  %v779_v5 = vsel %vm731_vm3, %v679_v47, 0.0 }
  0x87   :  { %v553_v6 = vsub.f32 %v425_v44, %v489_v49  ;;  %v611_v37 = vmul.f32 %v546_v57, %v546_v57  ;;  %v614_v20 = vmul.f32 %v549_v28, %v549_v28  ;;  %v778_v7 = vadd.f32 %v777_v60, %v776_v61 }
  0x88   :  { %v682_v8 = vmul.f32 %v1278_v9, %v607_v24  ;;  %v685_v11 = vmul.f32 %v1282_v10, %v610_v63  ;;  %v717_v27 = vadd.f32 %v716_v1, %v678_v50  ;;  %v781_v62 = vsel %vm731_vm3, %v681_v51, 0.0 }
  0x89   :  { %v552_v38 = vsub.f32 %v424_v19, %v488_v0  ;;  %v613_v14 = vmul.f32 %v548_v18, %v548_v18  ;;  %v616_v26 = vmul.f32 %v551_v2, %v551_v2  ;;  %v780_v12 = vadd.f32 %v779_v5, %v778_v7 }
  0x8a   :  { %v684_v30 = vmul.f32 %v1278_v9, %v609_v25  ;;  %v687_v3 = vmul.f32 %v1282_v10, %v612_v56  ;;  %v718_v35 = vadd.f32 %v717_v27, %v680_v59  ;;  %v783_v57 = vsel %vm731_vm3, %v683_v4, 0.0 }
  0x8b   :  { %v615_v46 = vmul.f32 %v550_v52, %v550_v52  ;;  %v618_v58 = vmul.f32 %v553_v6, %v553_v6  ;;  %v782_v23 = vadd.f32 %v781_v62, %v780_v12  ;;  %v686_v16 = vmul.f32 %v1278_v9, %v611_v37 }
  0x8c   :  { %v689_v41 = vmul.f32 %v1282_v10, %v614_v20  ;;  %v719_v15 = vadd.f32 %v718_v35, %v682_v8  ;;  %v785_v42 = vsel %vm731_vm3, %v685_v11, 0.0  ;;  %v617_v18 = vmul.f32 %v552_v38, %v552_v38 }
  0x8d   :  { %v784_v21 = vadd.f32 %v783_v57, %v782_v23  ;;  %v688_v22 = vmul.f32 %v1278_v9, %v613_v14  ;;  %v691_v29 = vmul.f32 %v1282_v10, %v616_v26  ;;  %v787_v31 = vsel %vm731_vm3, %v687_v3, 0.0 }
  0x8e   :  { %v720_v13 = vadd.f32 %v719_v15, %v684_v30  ;;  %v690_v34 = vmul.f32 %v1278_v9, %v615_v46  ;;  %v693_v39 = vmul.f32 %v1282_v10, %v618_v58  ;;  %v789_v54 = vsel %vm731_vm3, %v689_v41, 0.0 }
  0x8f   :  { %v786_v32 = vadd.f32 %v785_v42, %v784_v21  ;;  %v692_v36 = vmul.f32 %v1278_v9, %v617_v18  ;;  %v791_v40 = vsel %vm731_vm3, %v691_v29, 0.0 }
  0x90   :  { %v721_v28 = vadd.f32 %v720_v13, %v686_v16  ;;  %v793_v63 = vsel %vm731_vm3, %v693_v39, 0.0 }
  0x91   :  { %v788_v43 = vadd.f32 %v787_v31, %v786_v32 }
  0x92   :  { %v722_v48 = vadd.f32 %v721_v28, %v688_v22 }
  0x93   :  { %v790_v17 = vadd.f32 %v789_v54, %v788_v43 }
  0x94   :  { %v723_v24 = vadd.f32 %v722_v48, %v690_v34 }
  0x95   :  { %v792_v53 = vadd.f32 %v791_v40, %v790_v17 }
  0x96   :  { %v724_v10 = vadd.f32 %v723_v24, %v692_v36 }
  0x97   :  { %v794_v49 = vadd.f32 %v793_v63, %v792_v53 }
  0x98   :  { %v725_v33 = vrot.slane %v724_v10, 4 }
  0x99   :  { %v795_v60 = vrot.slane %v794_v49, 4 }
  0x9a   :  { %v726_v2 = vadd.f32 %v725_v33, %v724_v10 }
  0x9b   :  { %v796_v25 = vadd.f32 %v795_v60, %v794_v49 }
  0x9c   :  { %v727_v19 = vrot.slane %v726_v2, 2 }
  0x9d   :  { %v797_v0 = vrot.slane %v796_v25, 2 }
  0x9e   :  { %v728_v1 = vadd.f32 %v727_v19, %v726_v2 }
  0x9f   :  { %v798_v6 = vadd.f32 %v797_v0, %v796_v25 }
  0xa0   :  { %v130_v47 = vpop.xlane.xlu1 %129  ;;  %v729_v20 = vrot.slane %v728_v1, 1 }
  0xa1   :  { %v131_v52 = vrot.slane %v130_v47, 4  ;;  %v799_v8 = vrot.slane %v798_v6, 1 }
  0xa2   :  { %v730_v27 = vadd.f32 %v729_v20, %v728_v1 }
  0xa3   :  { %v63_v45 = vpop.xlane.xlu0 %62  ;;  %v132_v51 = vadd.f32 %v131_v52, %v130_v47  ;;  %v800_v14 = vadd.f32 %v799_v8, %v798_v6 }
  0xa4   :  { %v64_v55 = vrot.slane %v63_v45, 4  ;;  %v801_v12 = vsel %vm60_vm0, %v730_v27, 0.0 }
  0xa5   :  { %v133_v56 = vrot.slane %v132_v51, 2  ;;  %v803_v57 = vsel %vm802_vm4, %v800_v14, 0.0 }
  0xa6   :  { %v65_v44 = vadd.f32 %v64_v55, %v63_v45  ;;  %v804_v58 = vadd.f32 %v803_v57, %v801_v12 }
  0xa7   :  { %v134_v37 = vadd.f32 %v133_v56, %v132_v51 }
  0xa8   :  { %v66_v50 = vrot.slane %v65_v44, 2  ;;  %805 = vadd.xlane.f32.xlu0 %v804_v58 }
  0xa9   :  { %v135_v26 = vrot.slane %v134_v37, 1 }
  0xaa   :  { %v67_v9 = vadd.f32 %v66_v50, %v65_v44 }
  0xab   :  { %v136_v15 = vadd.f32 %v135_v26, %v134_v37 }
  0xac   :  { %v68_v61 = vrot.slane %v67_v9, 1 }
  0xae   :  { %v69_v4 = vadd.f32 %v68_v61, %v67_v9 }
  0xb0   :  { %v109_v59 = vpop.xlane.xlu0 %108  ;;  %853 = vpush %v69_v4 }
  0xb1   :  { %v110_v5 = vrot.slane %v109_v59, 4 }
  0xb3   :  { %v111_v7 = vadd.f32 %v110_v5, %v109_v59 }
  0xb4   :  { %v202_v11 = vpop.xlane.xlu0 %201  ;;  %v173_v30 = vpop.xlane.xlu1 %172 }
  0xb5   :  { %v112_v62 = vrot.slane %v111_v7, 2  ;;  %v203_v38 = vrot.slane %v202_v11, 4  ;;  %v174_v46 = vrot.slane %v173_v30, 4 }
  0xb7   :  { %v204_v3 = vadd.f32 %v203_v38, %v202_v11  ;;  %v113_v35 = vadd.f32 %v112_v62, %v111_v7  ;;  %v175_v41 = vadd.f32 %v174_v46, %v173_v30 }
  0xb9   :  { %v205_v23 = vrot.slane %v204_v3, 2  ;;  %v114_v16 = vrot.slane %v113_v35, 1  ;;  %v176_v21 = vrot.slane %v175_v41, 2 }
  0xbb   :  { %v115_v42 = vadd.f32 %v114_v16, %v113_v35  ;;  %v206_v18 = vadd.f32 %v205_v23, %v204_v3  ;;  %v177_v29 = vadd.f32 %v176_v21, %v175_v41 }
  0xbd   :  { %855 = vpush %v115_v42  ;;  %v207_v22 = vrot.slane %v206_v18, 1  ;;  %v178_v13 = vrot.slane %v177_v29, 1 }
  0xbe   :  { %857 = vpush %v136_v15 }
  0xbf   :  { %v208_v31 = vadd.f32 %v207_v22, %v206_v18  ;;  %v179_v32 = vadd.f32 %v178_v13, %v177_v29 }
  0xc1   :  { %859 = vpush %v179_v32 }
  0xc2   :  { %861 = vpush %v208_v31 }
  0xe1   :  { %s854_s10 = spop %853 }
  0xe2   :  { %s71_s11 = smul.f32 0.00048828125, %s854_s10 }
  0xe4   :  { %826 = sst [smem:[#allocation2 + $0x2]] %s71_s11  ;;  %s118_s9 = smul.f32 2.0, %s71_s11 }
  0xe6   :  { %v353_v34 = vpop.xlane.xlu1 %352 }
  0xe7   :  { %v354_v39 = vrot.slane %v353_v34, 4 }
  0xe9   :  { %v355_v28 = vadd.f32 %v354_v39, %v353_v34 }
  0xeb   :  { %v356_v54 = vrot.slane %v355_v28, 2 }
  0xed   :  { %v357_v43 = vadd.f32 %v356_v54, %v355_v28 }
  0xee   :  { %s856_s22 = spop %855 }
  0xef   :  { %s117_s1 = smul.f32 0.00016276042, %s856_s22  ;;  %s858_s23 = spop %857  ;;  %v358_v36 = vrot.slane %v357_v43, 1 }
  0xf0   :  { %s138_s4 = smul.f32 0.00390625, %s858_s23 }
  0xf1   :  { %s119_s12 = sadd.f32 %s118_s9, %s117_s1  ;;  %v359_v48 = vadd.f32 %v358_v36, %v357_v43 }
  0xf2   :  { %824 = sst [smem:[#allocation2 + $0x1]] %s117_s1  ;;  %s860_s24 = spop %859 }
  0xf3   :  { %s182_s3 = sadd.f32 %s138_s4, %s119_s12  ;;  %s181_s25 = smul.f32 0.00390625, %s860_s24  ;;  %863 = vpush %v359_v48 }
  0xf4   :  { %828 = sst [smem:[#allocation2 + $0x3]] %s138_s4  ;;  %s862_s26 = spop %861 }
  0xf5   :  { %s210_s5 = smul.f32 0.0006510417, %s862_s26  ;;  %830 = sst [smem:[#allocation2 + $0x4]] %s181_s25 }
  0xf6   :  { %s183_s27 = smul.f32 0.1, %s181_s25 }
  0xf7   :  { %s815_s28 = smul.f32 0.1, %s210_s5  ;;  %832 = sst [smem:[#allocation2 + $0x5]] %s210_s5 }
  0xf8   :  { %s184_s29 = sadd.f32 %s183_s27, %s182_s3 }
  0xfa   :  { %s816_s6 = sadd.f32 %s815_s28, %s184_s29 }
 0x124   :  { %s864_s7 = spop %863 }
 0x125   :  { %s361_s30 = smul.f32 0.003616898, %s864_s7 }
 0x127   :  { %s817_s14 = smul.f32 10.0, %s361_s30  ;;  %834 = sst [smem:[#allocation2 + $0x6]] %s361_s30 }
 0x129   :  { %s818_s15 = sadd.f32 %s817_s14, %s816_s6 }
 0x135   :  { %v806_v40 = vpop.xlane.xlu0 %805 }
 0x136   :  { %v807_v45 = vrot.slane %v806_v40, 4 }
 0x138   :  { %v808_v47 = vadd.f32 %v807_v45, %v806_v40 }
 0x13a   :  { %v809_v17 = vrot.slane %v808_v47, 2 }
 0x13c   :  { %v810_v55 = vadd.f32 %v809_v17, %v808_v47 }
 0x13e   :  { %v811_v52 = vrot.slane %v810_v55, 1 }
 0x140   :  { %v812_v24 = vadd.f32 %v811_v52, %v810_v55 }
 0x142   :  { %865 = vpush %v812_v24 }
 0x173   :  { %s866_s16 = spop %865 }
 0x174   :  { %s814_s17 = smul.f32 0.0026041667, %s866_s16 }
 0x176   :  { %s819_s2 = smul.f32 10.0, %s814_s17  ;;  %836 = sst [smem:[#allocation2 + $0x7]] %s814_s17 }
 0x178   :  { %s820_s18 = sadd.f32 %s819_s2, %s818_s15 }
 0x17a   :  { %822 = sst [smem:[#allocation2]] %s820_s18 }
 0x17b   :  { %879 = shalt.err (!%p876_p2)
}
 0x17c   :  { %s882_s9 = smov [#allocation2]  }
 0x17d   :  { %844 = dma.smem_to_hbm %s882_s9, 16, %s1930_s13, [#allocation3]  }
 0x17e   :  { %880 = dma.done.wait [#allocation3], 16  }
 0x17f   :  { %881 = vsyncadd [#allocation3], 4294967280 }
 0x180   :  { %848 = sfence }
 0x181   :  { %849 = vsyncpa [#allocation3], 1 }

</bundles_post_ra>
